<compile_context>
chip_gen: v6e
topology: v6e:2x2x1
jax: 0.10.0
libtpu: 0.0.40
codegen_flags: <defaults>
</compile_context>

<pallas_src>
import jax
import jax.numpy as jnp
from jax.experimental import pallas as pl
from jax.experimental.pallas import tpu as pltpu


# ---------------------------------------------------------------------------
# Kernel: the whole decoder (all T_dec steps) in one invocation.
# ---------------------------------------------------------------------------
def decoder_kernel(ids_ref, enc_ref, xg_ref, whh_ref, woh_ref, woc_ref,
                   bout_ref, out_ref):
    T_enc, B, H = enc_ref.shape
    T_dec = ids_ref.shape[1]
    V = out_ref.shape[-1]

    enc = enc_ref[...]            # (T_enc, B, H) original seq-first layout
    xg = xg_ref[...]              # (V, 3H): emb @ W_ih[i|g|o]^T + bias  (token table)
    whh = whh_ref[...]            # (H, 3H): W_hh[i|g|o]^T

    # ---- in-kernel embedding "gather" fused with x @ W_ih (+bias):
    # one-hot(token) @ xg is an exact row selection -> (T_dec*B, 3H) batched
    # input-side pre-activations, computed in ONE small MXU dot before the loop.
    ids = ids_ref[...]            # (B, T_dec) int32
    iota_v = jax.lax.broadcasted_iota(jnp.int32, (B, V), 1)
    onehots = [(ids[:, t:t + 1] == iota_v).astype(jnp.float32)
               for t in range(T_dec)]
    onehot_all = jnp.concatenate(onehots, axis=0)                      # (T_dec*B, V) t-major
    x_pre_all = jnp.dot(onehot_all, xg,
                        preferred_element_type=jnp.float32)            # (T_dec*B, 3H)

    # ---- serial recurrence: only the LSTM cell stays on the critical path,
    # one fused h-side MXU dot per step.  c_prev == 0 every step (the torch
    # module re-feeds zeros), so c = i*g and the f gate is dead / dropped.
    # TODO(synk): if T_dec grows beyond ~16, switch to lax.fori_loop with a VMEM h carry.
    h = enc[T_enc - 1]            # dec_hid init = encoder_outputs[-1]   (B, H)
    hs = []
    for t in range(T_dec):
        pre = x_pre_all[t * B:(t + 1) * B, :] + jnp.dot(
            h, whh, preferred_element_type=jnp.float32)                # (B, 3H)
        i_g = jax.nn.sigmoid(pre[:, 0:H])
        g_g = jnp.tanh(pre[:, H:2 * H])
        o_g = jax.nn.sigmoid(pre[:, 2 * H:3 * H])
        h = o_g * jnp.tanh(i_g * g_g)                                  # (B, H)
        hs.append(h)
    hs_all = jnp.concatenate(hs, axis=0)                               # (T_dec*B, H) t-major

    # ---- attention, hoisted out of the recurrence and batched over all
    # T_dec*B rows; unrolled over T_enc (mirrors the torch Attention loop).
    # Only elementwise VPU work + lane reductions; exact softmax division.
    enc_rep = [jnp.concatenate([enc[s]] * T_dec, axis=0)               # (T_dec*B, H)
               for s in range(T_enc)]
    scores = [jnp.sum(hs_all * enc_rep[s], axis=-1, keepdims=True)     # (T_dec*B, 1)
              for s in range(T_enc)]
    m = scores[0]
    for s in range(1, T_enc):
        m = jnp.maximum(m, scores[s])
    es = [jnp.exp(scores[s] - m) for s in range(T_enc)]
    denom = es[0]
    for s in range(1, T_enc):
        denom = denom + es[s]
    inv = 1.0 / denom                                                  # exact (no approx recip)
    ctx = (es[0] * inv) * enc_rep[0]
    for s in range(1, T_enc):
        ctx = ctx + (es[s] * inv) * enc_rep[s]                         # (T_dec*B, H)

    # ---- output projection (split weights: no lane concat of [h, ctx]) and
    # log_softmax, batched over all steps; single output store.
    logits = (jnp.dot(hs_all, woh_ref[...], preferred_element_type=jnp.float32)
              + jnp.dot(ctx, woc_ref[...], preferred_element_type=jnp.float32)
              + bout_ref[...])                                         # (T_dec*B, V)
    lmax = jnp.max(logits, axis=-1, keepdims=True)
    lse = lmax + jnp.log(jnp.sum(jnp.exp(logits - lmax), axis=-1, keepdims=True))
    out_ref[...] = (logits - lse).reshape(T_dec, B, V)


# ---------------------------------------------------------------------------
# One-time parameter preparation (NOT per forward call).
# ---------------------------------------------------------------------------
def prepare_decoder_params(params):
    emb_table, w_ih, w_hh, b_ih, b_hh, w_out, b_out = params
    H = w_hh.shape[1]
    V = w_out.shape[0]
    # PyTorch LSTM gate order is (i, f, g, o); f is dead because the module
    # feeds a zero cell state at every step, so keep only (i, g, o).
    gate_ids = (0, 2, 3)
    w_ih_g = jnp.concatenate([w_ih[g * H:(g + 1) * H, :].T for g in gate_ids],
                             axis=1)                                   # (E, 3H)
    w_hh_g = jnp.concatenate([w_hh[g * H:(g + 1) * H, :].T for g in gate_ids],
                             axis=1)                                   # (H, 3H)
    b_g = jnp.concatenate([(b_ih + b_hh)[g * H:(g + 1) * H] for g in gate_ids])  # (3H,)
    # Fuse the embedding table with the input-side gate matmul and bias:
    # x_gate_table[token] == embed(token) @ W_ih[i|g|o]^T + b.  Done once at
    # full f32 precision, so the K=128 contraction leaves the per-call path.
    x_gate_table = jnp.dot(emb_table, w_ih_g,
                           precision=jax.lax.Precision.HIGHEST) + b_g[None, :]   # (V, 3H)
    # Split the output Linear so the kernel avoids the [h, ctx] lane concat.
    w_out_h = w_out[:, :H].T       # (H, V) multiplies dec_hid
    w_out_c = w_out[:, H:].T       # (H, V) multiplies context
    b_out_2d = b_out.reshape(1, V)
    return x_gate_table, w_hh_g, w_out_h, w_out_c, b_out_2d


# ---------------------------------------------------------------------------
# Forward wrapper: no per-call XLA restructuring ops, gridless pallas_call.
# ---------------------------------------------------------------------------
def decoder_forward(target_inputs, encoder_outputs, prepped):
    """target_inputs (B, T_dec) int32, encoder_outputs (T_enc, B, H) f32."""
    x_gate_table, w_hh_g, w_out_h, w_out_c, b_out_2d = prepped
    T_enc, B, H = encoder_outputs.shape
    B2, T_dec = target_inputs.shape
    assert B2 == B
    V = w_out_h.shape[1]

    vmem = pl.BlockSpec(memory_space=pltpu.MemorySpace.VMEM)
    return pl.pallas_call(
        decoder_kernel,
        out_shape=jax.ShapeDtypeStruct((T_dec, B, V), jnp.float32),
        in_specs=[vmem] * 7,
        out_specs=vmem,
    )(target_inputs.astype(jnp.int32), encoder_outputs,
      x_gate_table, w_hh_g, w_out_h, w_out_c, b_out_2d)


# ---------------------------------------------------------------------------
# Pure-JAX reference (mirrors the PyTorch forward line by line).
# ---------------------------------------------------------------------------
def decoder_reference(target_inputs, encoder_outputs, params):
    emb_table, w_ih, w_hh, b_ih, b_hh, w_out, b_out = params
    T_enc, B, H = encoder_outputs.shape
    dec_hid = encoder_outputs[-1]                        # (B, H)
    enc_b = jnp.transpose(encoder_outputs, (1, 0, 2))    # (B, T_enc, H)
    outs = []
    for t in range(target_inputs.shape[1]):
        x = emb_table[target_inputs[:, t]]               # (B, E)
        gates = x @ w_ih.T + b_ih + dec_hid @ w_hh.T + b_hh
        i_g = jax.nn.sigmoid(gates[:, 0:H])
        g_g = jnp.tanh(gates[:, 2 * H:3 * H])
        o_g = jax.nn.sigmoid(gates[:, 3 * H:4 * H])
        c = i_g * g_g                                    # c_prev always zero
        h = o_g * jnp.tanh(c)
        dec_hid = h
        scores = jnp.einsum('bh,bth->bt', h, enc_b)
        align = jax.nn.softmax(scores, axis=1)
        ctx = jnp.einsum('bt,bth->bh', align, enc_b)
        combined = jnp.concatenate([h, ctx], axis=1)
        logits = combined @ w_out.T + b_out
        outs.append(jax.nn.log_softmax(logits, axis=1))
    return jnp.stack(outs)


# ---------------------------------------------------------------------------
# main
# ---------------------------------------------------------------------------
if __name__ == "__main__":
    # Small shapes consistent with the module (embedding dim fixed at 128).
    V = 16          # output_size (vocab)
    H = 32          # hidden_size
    E = 128         # embedding dim
    B = 8           # batch
    T_ENC = 8       # encoder time steps
    T_DEC = 6       # decoder time steps

    key = jax.random.PRNGKey(0)
    keys = jax.random.split(key, 10)

    # Deterministic synthetic parameters (nn.Embedding / nn.LSTM / nn.Linear shapes).
    emb_table = 0.1 * jax.random.normal(keys[0], (V, E), jnp.float32)
    w_ih = 0.1 * jax.random.normal(keys[1], (4 * H, E), jnp.float32)   # weight_ih_l0
    w_hh = 0.1 * jax.random.normal(keys[2], (4 * H, H), jnp.float32)   # weight_hh_l0
    b_ih = 0.1 * jax.random.normal(keys[3], (4 * H,), jnp.float32)
    b_hh = 0.1 * jax.random.normal(keys[4], (4 * H,), jnp.float32)
    w_out = 0.1 * jax.random.normal(keys[5], (V, 2 * H), jnp.float32)  # Linear(2H, V)
    b_out = 0.1 * jax.random.normal(keys[6], (V,), jnp.float32)
    params = (emb_table, w_ih, w_hh, b_ih, b_hh, w_out, b_out)

    # Inputs.
    target_inputs = jax.random.randint(keys[7], (B, T_DEC), 0, V, dtype=jnp.int32)
    encoder_outputs = jax.random.normal(keys[8], (T_ENC, B, H), jnp.float32)

    # One-time parameter prep, then the Pallas forward.
    prepped = prepare_decoder_params(params)
    out = decoder_forward(target_inputs, encoder_outputs, prepped)
    out = jax.block_until_ready(out)
    assert out.shape == (T_DEC, B, V), out.shape

    # Check against a highest-precision pure-JAX reference of the torch forward.
    with jax.default_matmul_precision("highest"):
        ref = decoder_reference(target_inputs, encoder_outputs, params)
    ref = jax.block_until_ready(ref)
    err = float(jnp.max(jnp.abs(out - ref)))
    # In-kernel f32 MXU dots may run as multi-pass bf16; allow a few-1e-3
    # absolute slack on log-probs of magnitude ~3 (still catches any
    # structural/semantic error, which would be O(0.1)+).
    assert err < 5e-3, err

    print("KERNEL_OK")
</pallas_src>

<mosaic_0001>
module attributes {stable_mosaic.version = 11 : i64} {
  func.func @decoder_kernel(%arg0: memref<8x6xi32, #tpu.memory_space<vmem>>, %arg1: memref<8x8x32xf32, #tpu.memory_space<vmem>>, %arg2: memref<16x96xf32, #tpu.memory_space<vmem>>, %arg3: memref<32x96xf32, #tpu.memory_space<vmem>>, %arg4: memref<32x16xf32, #tpu.memory_space<vmem>>, %arg5: memref<32x16xf32, #tpu.memory_space<vmem>>, %arg6: memref<1x16xf32, #tpu.memory_space<vmem>>, %arg7: memref<6x8x16xf32, #tpu.memory_space<vmem>>) attributes {dimension_semantics = [], scalar_prefetch = 0 : i64, scratch_operands = 0 : i64, tpu.core_type = #tpu.core_type<tc>} {
    %c0 = arith.constant 0 : index
    %c0_0 = arith.constant 0 : index
    %c0_1 = arith.constant 0 : index
    %0 = vector.load %arg1[%c0, %c0_0, %c0_1] : memref<8x8x32xf32, #tpu.memory_space<vmem>>, vector<8x8x32xf32>
    %c0_2 = arith.constant 0 : index
    %c0_3 = arith.constant 0 : index
    %1 = vector.load %arg2[%c0_2, %c0_3] : memref<16x96xf32, #tpu.memory_space<vmem>>, vector<16x96xf32>
    %c0_4 = arith.constant 0 : index
    %c0_5 = arith.constant 0 : index
    %2 = vector.load %arg3[%c0_4, %c0_5] : memref<32x96xf32, #tpu.memory_space<vmem>>, vector<32x96xf32>
    %c0_6 = arith.constant 0 : index
    %c0_7 = arith.constant 0 : index
    %3 = vector.load %arg0[%c0_6, %c0_7] : memref<8x6xi32, #tpu.memory_space<vmem>>, vector<8x6xi32>
    %4 = tpu.iota {dimensions = array<i32: 1>} : vector<8x16xi32>
    %5 = vector.extract_strided_slice %3 {offsets = [0, 0], sizes = [8, 1], strides = [1, 1]} : vector<8x6xi32> to vector<8x1xi32>
    %6 = vector.broadcast %5 : vector<8x1xi32> to vector<8x16xi32>
    %7 = arith.cmpi eq, %6, %4 : vector<8x16xi32>
    %8 = arith.extui %7 : vector<8x16xi1> to vector<8x16xi32>
    %9 = arith.sitofp %8 : vector<8x16xi32> to vector<8x16xf32>
    %10 = vector.extract_strided_slice %3 {offsets = [0, 1], sizes = [8, 1], strides = [1, 1]} : vector<8x6xi32> to vector<8x1xi32>
    %11 = vector.broadcast %10 : vector<8x1xi32> to vector<8x16xi32>
    %12 = arith.cmpi eq, %11, %4 : vector<8x16xi32>
    %13 = arith.extui %12 : vector<8x16xi1> to vector<8x16xi32>
    %14 = arith.sitofp %13 : vector<8x16xi32> to vector<8x16xf32>
    %15 = vector.extract_strided_slice %3 {offsets = [0, 2], sizes = [8, 1], strides = [1, 1]} : vector<8x6xi32> to vector<8x1xi32>
    %16 = vector.broadcast %15 : vector<8x1xi32> to vector<8x16xi32>
    %17 = arith.cmpi eq, %16, %4 : vector<8x16xi32>
    %18 = arith.extui %17 : vector<8x16xi1> to vector<8x16xi32>
    %19 = arith.sitofp %18 : vector<8x16xi32> to vector<8x16xf32>
    %20 = vector.extract_strided_slice %3 {offsets = [0, 3], sizes = [8, 1], strides = [1, 1]} : vector<8x6xi32> to vector<8x1xi32>
    %21 = vector.broadcast %20 : vector<8x1xi32> to vector<8x16xi32>
    %22 = arith.cmpi eq, %21, %4 : vector<8x16xi32>
    %23 = arith.extui %22 : vector<8x16xi1> to vector<8x16xi32>
    %24 = arith.sitofp %23 : vector<8x16xi32> to vector<8x16xf32>
    %25 = vector.extract_strided_slice %3 {offsets = [0, 4], sizes = [8, 1], strides = [1, 1]} : vector<8x6xi32> to vector<8x1xi32>
    %26 = vector.broadcast %25 : vector<8x1xi32> to vector<8x16xi32>
    %27 = arith.cmpi eq, %26, %4 : vector<8x16xi32>
    %28 = arith.extui %27 : vector<8x16xi1> to vector<8x16xi32>
    %29 = arith.sitofp %28 : vector<8x16xi32> to vector<8x16xf32>
    %30 = vector.extract_strided_slice %3 {offsets = [0, 5], sizes = [8, 1], strides = [1, 1]} : vector<8x6xi32> to vector<8x1xi32>
    %31 = vector.broadcast %30 : vector<8x1xi32> to vector<8x16xi32>
    %32 = arith.cmpi eq, %31, %4 : vector<8x16xi32>
    %33 = arith.extui %32 : vector<8x16xi1> to vector<8x16xi32>
    %34 = arith.sitofp %33 : vector<8x16xi32> to vector<8x16xf32>
    %35 = tpu.concatenate %9, %14, %19, %24, %29, %34 in 0 : vector<8x16xf32>, vector<8x16xf32>, vector<8x16xf32>, vector<8x16xf32>, vector<8x16xf32>, vector<8x16xf32> -> vector<48x16xf32>
    %cst = arith.constant dense<0.000000e+00> : vector<48x96xf32>
    %36 = tpu.matmul %35, %1, %cst {dimension_numbers = #tpu.dot_dimension_numbers<[1], [0], [0], [1], [0, 0, 1, 1], [], []>} : vector<48x16xf32>, vector<16x96xf32>, vector<48x96xf32> -> vector<48x96xf32>
    %37 = vector.extract_strided_slice %0 {offsets = [7, 0, 0], sizes = [1, 8, 32], strides = [1, 1, 1]} : vector<8x8x32xf32> to vector<1x8x32xf32>
    %38 = vector.shape_cast %37 : vector<1x8x32xf32> to vector<8x32xf32>
    %39 = vector.extract_strided_slice %36 {offsets = [0, 0], sizes = [8, 96], strides = [1, 1]} : vector<48x96xf32> to vector<8x96xf32>
    %cst_8 = arith.constant dense<0.000000e+00> : vector<8x96xf32>
    %40 = tpu.matmul %38, %2, %cst_8 {dimension_numbers = #tpu.dot_dimension_numbers<[1], [0], [0], [1], [0, 0, 1, 1], [], []>} : vector<8x32xf32>, vector<32x96xf32>, vector<8x96xf32> -> vector<8x96xf32>
    %41 = arith.addf %39, %40 : vector<8x96xf32>
    %42 = vector.extract_strided_slice %41 {offsets = [0, 0], sizes = [8, 32], strides = [1, 1]} : vector<8x96xf32> to vector<8x32xf32>
    %43 = arith.negf %42 : vector<8x32xf32>
    %44 = math.exp %43 : vector<8x32xf32>
    %cst_9 = arith.constant 1.000000e+00 : f32
    %45 = vector.broadcast %cst_9 : f32 to vector<8x32xf32>
    %46 = arith.addf %45, %44 : vector<8x32xf32>
    %47 = arith.divf %45, %46 : vector<8x32xf32>
    %48 = vector.extract_strided_slice %41 {offsets = [0, 32], sizes = [8, 32], strides = [1, 1]} : vector<8x96xf32> to vector<8x32xf32>
    %49 = math.tanh %48 : vector<8x32xf32>
    %50 = vector.extract_strided_slice %41 {offsets = [0, 64], sizes = [8, 32], strides = [1, 1]} : vector<8x96xf32> to vector<8x32xf32>
    %51 = arith.negf %50 : vector<8x32xf32>
    %52 = math.exp %51 : vector<8x32xf32>
    %cst_10 = arith.constant 1.000000e+00 : f32
    %53 = vector.broadcast %cst_10 : f32 to vector<8x32xf32>
    %54 = arith.addf %53, %52 : vector<8x32xf32>
    %55 = arith.divf %53, %54 : vector<8x32xf32>
    %56 = arith.mulf %47, %49 : vector<8x32xf32>
    %57 = math.tanh %56 : vector<8x32xf32>
    %58 = arith.mulf %55, %57 : vector<8x32xf32>
    %59 = vector.extract_strided_slice %36 {offsets = [8, 0], sizes = [8, 96], strides = [1, 1]} : vector<48x96xf32> to vector<8x96xf32>
    %cst_11 = arith.constant dense<0.000000e+00> : vector<8x96xf32>
    %60 = tpu.matmul %58, %2, %cst_11 {dimension_numbers = #tpu.dot_dimension_numbers<[1], [0], [0], [1], [0, 0, 1, 1], [], []>} : vector<8x32xf32>, vector<32x96xf32>, vector<8x96xf32> -> vector<8x96xf32>
    %61 = arith.addf %59, %60 : vector<8x96xf32>
    %62 = vector.extract_strided_slice %61 {offsets = [0, 0], sizes = [8, 32], strides = [1, 1]} : vector<8x96xf32> to vector<8x32xf32>
    %63 = arith.negf %62 : vector<8x32xf32>
    %64 = math.exp %63 : vector<8x32xf32>
    %cst_12 = arith.constant 1.000000e+00 : f32
    %65 = vector.broadcast %cst_12 : f32 to vector<8x32xf32>
    %66 = arith.addf %65, %64 : vector<8x32xf32>
    %67 = arith.divf %65, %66 : vector<8x32xf32>
    %68 = vector.extract_strided_slice %61 {offsets = [0, 32], sizes = [8, 32], strides = [1, 1]} : vector<8x96xf32> to vector<8x32xf32>
    %69 = math.tanh %68 : vector<8x32xf32>
    %70 = vector.extract_strided_slice %61 {offsets = [0, 64], sizes = [8, 32], strides = [1, 1]} : vector<8x96xf32> to vector<8x32xf32>
    %71 = arith.negf %70 : vector<8x32xf32>
    %72 = math.exp %71 : vector<8x32xf32>
    %cst_13 = arith.constant 1.000000e+00 : f32
    %73 = vector.broadcast %cst_13 : f32 to vector<8x32xf32>
    %74 = arith.addf %73, %72 : vector<8x32xf32>
    %75 = arith.divf %73, %74 : vector<8x32xf32>
    %76 = arith.mulf %67, %69 : vector<8x32xf32>
    %77 = math.tanh %76 : vector<8x32xf32>
    %78 = arith.mulf %75, %77 : vector<8x32xf32>
    %79 = vector.extract_strided_slice %36 {offsets = [16, 0], sizes = [8, 96], strides = [1, 1]} : vector<48x96xf32> to vector<8x96xf32>
    %cst_14 = arith.constant dense<0.000000e+00> : vector<8x96xf32>
    %80 = tpu.matmul %78, %2, %cst_14 {dimension_numbers = #tpu.dot_dimension_numbers<[1], [0], [0], [1], [0, 0, 1, 1], [], []>} : vector<8x32xf32>, vector<32x96xf32>, vector<8x96xf32> -> vector<8x96xf32>
    %81 = arith.addf %79, %80 : vector<8x96xf32>
    %82 = vector.extract_strided_slice %81 {offsets = [0, 0], sizes = [8, 32], strides = [1, 1]} : vector<8x96xf32> to vector<8x32xf32>
    %83 = arith.negf %82 : vector<8x32xf32>
    %84 = math.exp %83 : vector<8x32xf32>
    %cst_15 = arith.constant 1.000000e+00 : f32
    %85 = vector.broadcast %cst_15 : f32 to vector<8x32xf32>
    %86 = arith.addf %85, %84 : vector<8x32xf32>
    %87 = arith.divf %85, %86 : vector<8x32xf32>
    %88 = vector.extract_strided_slice %81 {offsets = [0, 32], sizes = [8, 32], strides = [1, 1]} : vector<8x96xf32> to vector<8x32xf32>
    %89 = math.tanh %88 : vector<8x32xf32>
    %90 = vector.extract_strided_slice %81 {offsets = [0, 64], sizes = [8, 32], strides = [1, 1]} : vector<8x96xf32> to vector<8x32xf32>
    %91 = arith.negf %90 : vector<8x32xf32>
    %92 = math.exp %91 : vector<8x32xf32>
    %cst_16 = arith.constant 1.000000e+00 : f32
    %93 = vector.broadcast %cst_16 : f32 to vector<8x32xf32>
    %94 = arith.addf %93, %92 : vector<8x32xf32>
    %95 = arith.divf %93, %94 : vector<8x32xf32>
    %96 = arith.mulf %87, %89 : vector<8x32xf32>
    %97 = math.tanh %96 : vector<8x32xf32>
    %98 = arith.mulf %95, %97 : vector<8x32xf32>
    %99 = vector.extract_strided_slice %36 {offsets = [24, 0], sizes = [8, 96], strides = [1, 1]} : vector<48x96xf32> to vector<8x96xf32>
    %cst_17 = arith.constant dense<0.000000e+00> : vector<8x96xf32>
    %100 = tpu.matmul %98, %2, %cst_17 {dimension_numbers = #tpu.dot_dimension_numbers<[1], [0], [0], [1], [0, 0, 1, 1], [], []>} : vector<8x32xf32>, vector<32x96xf32>, vector<8x96xf32> -> vector<8x96xf32>
    %101 = arith.addf %99, %100 : vector<8x96xf32>
    %102 = vector.extract_strided_slice %101 {offsets = [0, 0], sizes = [8, 32], strides = [1, 1]} : vector<8x96xf32> to vector<8x32xf32>
    %103 = arith.negf %102 : vector<8x32xf32>
    %104 = math.exp %103 : vector<8x32xf32>
    %cst_18 = arith.constant 1.000000e+00 : f32
    %105 = vector.broadcast %cst_18 : f32 to vector<8x32xf32>
    %106 = arith.addf %105, %104 : vector<8x32xf32>
    %107 = arith.divf %105, %106 : vector<8x32xf32>
    %108 = vector.extract_strided_slice %101 {offsets = [0, 32], sizes = [8, 32], strides = [1, 1]} : vector<8x96xf32> to vector<8x32xf32>
    %109 = math.tanh %108 : vector<8x32xf32>
    %110 = vector.extract_strided_slice %101 {offsets = [0, 64], sizes = [8, 32], strides = [1, 1]} : vector<8x96xf32> to vector<8x32xf32>
    %111 = arith.negf %110 : vector<8x32xf32>
    %112 = math.exp %111 : vector<8x32xf32>
    %cst_19 = arith.constant 1.000000e+00 : f32
    %113 = vector.broadcast %cst_19 : f32 to vector<8x32xf32>
    %114 = arith.addf %113, %112 : vector<8x32xf32>
    %115 = arith.divf %113, %114 : vector<8x32xf32>
    %116 = arith.mulf %107, %109 : vector<8x32xf32>
    %117 = math.tanh %116 : vector<8x32xf32>
    %118 = arith.mulf %115, %117 : vector<8x32xf32>
    %119 = vector.extract_strided_slice %36 {offsets = [32, 0], sizes = [8, 96], strides = [1, 1]} : vector<48x96xf32> to vector<8x96xf32>
    %cst_20 = arith.constant dense<0.000000e+00> : vector<8x96xf32>
    %120 = tpu.matmul %118, %2, %cst_20 {dimension_numbers = #tpu.dot_dimension_numbers<[1], [0], [0], [1], [0, 0, 1, 1], [], []>} : vector<8x32xf32>, vector<32x96xf32>, vector<8x96xf32> -> vector<8x96xf32>
    %121 = arith.addf %119, %120 : vector<8x96xf32>
    %122 = vector.extract_strided_slice %121 {offsets = [0, 0], sizes = [8, 32], strides = [1, 1]} : vector<8x96xf32> to vector<8x32xf32>
    %123 = arith.negf %122 : vector<8x32xf32>
    %124 = math.exp %123 : vector<8x32xf32>
    %cst_21 = arith.constant 1.000000e+00 : f32
    %125 = vector.broadcast %cst_21 : f32 to vector<8x32xf32>
    %126 = arith.addf %125, %124 : vector<8x32xf32>
    %127 = arith.divf %125, %126 : vector<8x32xf32>
    %128 = vector.extract_strided_slice %121 {offsets = [0, 32], sizes = [8, 32], strides = [1, 1]} : vector<8x96xf32> to vector<8x32xf32>
    %129 = math.tanh %128 : vector<8x32xf32>
    %130 = vector.extract_strided_slice %121 {offsets = [0, 64], sizes = [8, 32], strides = [1, 1]} : vector<8x96xf32> to vector<8x32xf32>
    %131 = arith.negf %130 : vector<8x32xf32>
    %132 = math.exp %131 : vector<8x32xf32>
    %cst_22 = arith.constant 1.000000e+00 : f32
    %133 = vector.broadcast %cst_22 : f32 to vector<8x32xf32>
    %134 = arith.addf %133, %132 : vector<8x32xf32>
    %135 = arith.divf %133, %134 : vector<8x32xf32>
    %136 = arith.mulf %127, %129 : vector<8x32xf32>
    %137 = math.tanh %136 : vector<8x32xf32>
    %138 = arith.mulf %135, %137 : vector<8x32xf32>
    %139 = vector.extract_strided_slice %36 {offsets = [40, 0], sizes = [8, 96], strides = [1, 1]} : vector<48x96xf32> to vector<8x96xf32>
    %cst_23 = arith.constant dense<0.000000e+00> : vector<8x96xf32>
    %140 = tpu.matmul %138, %2, %cst_23 {dimension_numbers = #tpu.dot_dimension_numbers<[1], [0], [0], [1], [0, 0, 1, 1], [], []>} : vector<8x32xf32>, vector<32x96xf32>, vector<8x96xf32> -> vector<8x96xf32>
    %141 = arith.addf %139, %140 : vector<8x96xf32>
    %142 = vector.extract_strided_slice %141 {offsets = [0, 0], sizes = [8, 32], strides = [1, 1]} : vector<8x96xf32> to vector<8x32xf32>
    %143 = arith.negf %142 : vector<8x32xf32>
    %144 = math.exp %143 : vector<8x32xf32>
    %cst_24 = arith.constant 1.000000e+00 : f32
    %145 = vector.broadcast %cst_24 : f32 to vector<8x32xf32>
    %146 = arith.addf %145, %144 : vector<8x32xf32>
    %147 = arith.divf %145, %146 : vector<8x32xf32>
    %148 = vector.extract_strided_slice %141 {offsets = [0, 32], sizes = [8, 32], strides = [1, 1]} : vector<8x96xf32> to vector<8x32xf32>
    %149 = math.tanh %148 : vector<8x32xf32>
    %150 = vector.extract_strided_slice %141 {offsets = [0, 64], sizes = [8, 32], strides = [1, 1]} : vector<8x96xf32> to vector<8x32xf32>
    %151 = arith.negf %150 : vector<8x32xf32>
    %152 = math.exp %151 : vector<8x32xf32>
    %cst_25 = arith.constant 1.000000e+00 : f32
    %153 = vector.broadcast %cst_25 : f32 to vector<8x32xf32>
    %154 = arith.addf %153, %152 : vector<8x32xf32>
    %155 = arith.divf %153, %154 : vector<8x32xf32>
    %156 = arith.mulf %147, %149 : vector<8x32xf32>
    %157 = math.tanh %156 : vector<8x32xf32>
    %158 = arith.mulf %155, %157 : vector<8x32xf32>
    %159 = tpu.concatenate %58, %78, %98, %118, %138, %158 in 0 : vector<8x32xf32>, vector<8x32xf32>, vector<8x32xf32>, vector<8x32xf32>, vector<8x32xf32>, vector<8x32xf32> -> vector<48x32xf32>
    %160 = vector.extract_strided_slice %0 {offsets = [0, 0, 0], sizes = [1, 8, 32], strides = [1, 1, 1]} : vector<8x8x32xf32> to vector<1x8x32xf32>
    %161 = vector.shape_cast %160 : vector<1x8x32xf32> to vector<8x32xf32>
    %162 = tpu.concatenate %161, %161, %161, %161, %161, %161 in 0 : vector<8x32xf32>, vector<8x32xf32>, vector<8x32xf32>, vector<8x32xf32>, vector<8x32xf32>, vector<8x32xf32> -> vector<48x32xf32>
    %163 = vector.extract_strided_slice %0 {offsets = [1, 0, 0], sizes = [1, 8, 32], strides = [1, 1, 1]} : vector<8x8x32xf32> to vector<1x8x32xf32>
    %164 = vector.shape_cast %163 : vector<1x8x32xf32> to vector<8x32xf32>
    %165 = tpu.concatenate %164, %164, %164, %164, %164, %164 in 0 : vector<8x32xf32>, vector<8x32xf32>, vector<8x32xf32>, vector<8x32xf32>, vector<8x32xf32>, vector<8x32xf32> -> vector<48x32xf32>
    %166 = vector.extract_strided_slice %0 {offsets = [2, 0, 0], sizes = [1, 8, 32], strides = [1, 1, 1]} : vector<8x8x32xf32> to vector<1x8x32xf32>
    %167 = vector.shape_cast %166 : vector<1x8x32xf32> to vector<8x32xf32>
    %168 = tpu.concatenate %167, %167, %167, %167, %167, %167 in 0 : vector<8x32xf32>, vector<8x32xf32>, vector<8x32xf32>, vector<8x32xf32>, vector<8x32xf32>, vector<8x32xf32> -> vector<48x32xf32>
    %169 = vector.extract_strided_slice %0 {offsets = [3, 0, 0], sizes = [1, 8, 32], strides = [1, 1, 1]} : vector<8x8x32xf32> to vector<1x8x32xf32>
    %170 = vector.shape_cast %169 : vector<1x8x32xf32> to vector<8x32xf32>
    %171 = tpu.concatenate %170, %170, %170, %170, %170, %170 in 0 : vector<8x32xf32>, vector<8x32xf32>, vector<8x32xf32>, vector<8x32xf32>, vector<8x32xf32>, vector<8x32xf32> -> vector<48x32xf32>
    %172 = vector.extract_strided_slice %0 {offsets = [4, 0, 0], sizes = [1, 8, 32], strides = [1, 1, 1]} : vector<8x8x32xf32> to vector<1x8x32xf32>
    %173 = vector.shape_cast %172 : vector<1x8x32xf32> to vector<8x32xf32>
    %174 = tpu.concatenate %173, %173, %173, %173, %173, %173 in 0 : vector<8x32xf32>, vector<8x32xf32>, vector<8x32xf32>, vector<8x32xf32>, vector<8x32xf32>, vector<8x32xf32> -> vector<48x32xf32>
    %175 = vector.extract_strided_slice %0 {offsets = [5, 0, 0], sizes = [1, 8, 32], strides = [1, 1, 1]} : vector<8x8x32xf32> to vector<1x8x32xf32>
    %176 = vector.shape_cast %175 : vector<1x8x32xf32> to vector<8x32xf32>
    %177 = tpu.concatenate %176, %176, %176, %176, %176, %176 in 0 : vector<8x32xf32>, vector<8x32xf32>, vector<8x32xf32>, vector<8x32xf32>, vector<8x32xf32>, vector<8x32xf32> -> vector<48x32xf32>
    %178 = vector.extract_strided_slice %0 {offsets = [6, 0, 0], sizes = [1, 8, 32], strides = [1, 1, 1]} : vector<8x8x32xf32> to vector<1x8x32xf32>
    %179 = vector.shape_cast %178 : vector<1x8x32xf32> to vector<8x32xf32>
    %180 = tpu.concatenate %179, %179, %179, %179, %179, %179 in 0 : vector<8x32xf32>, vector<8x32xf32>, vector<8x32xf32>, vector<8x32xf32>, vector<8x32xf32>, vector<8x32xf32> -> vector<48x32xf32>
    %181 = vector.extract_strided_slice %0 {offsets = [7, 0, 0], sizes = [1, 8, 32], strides = [1, 1, 1]} : vector<8x8x32xf32> to vector<1x8x32xf32>
    %182 = vector.shape_cast %181 : vector<1x8x32xf32> to vector<8x32xf32>
    %183 = tpu.concatenate %182, %182, %182, %182, %182, %182 in 0 : vector<8x32xf32>, vector<8x32xf32>, vector<8x32xf32>, vector<8x32xf32>, vector<8x32xf32>, vector<8x32xf32> -> vector<48x32xf32>
    %184 = arith.mulf %159, %162 : vector<48x32xf32>
    %cst_26 = arith.constant dense<0.000000e+00> : vector<48xf32>
    %185 = vector.multi_reduction <add>, %184, %cst_26 [1] : vector<48x32xf32> to vector<48xf32>
    %186 = vector.shape_cast %185 : vector<48xf32> to vector<48x1xf32>
    %187 = arith.mulf %159, %165 : vector<48x32xf32>
    %cst_27 = arith.constant dense<0.000000e+00> : vector<48xf32>
    %188 = vector.multi_reduction <add>, %187, %cst_27 [1] : vector<48x32xf32> to vector<48xf32>
    %189 = vector.shape_cast %188 : vector<48xf32> to vector<48x1xf32>
    %190 = arith.mulf %159, %168 : vector<48x32xf32>
    %cst_28 = arith.constant dense<0.000000e+00> : vector<48xf32>
    %191 = vector.multi_reduction <add>, %190, %cst_28 [1] : vector<48x32xf32> to vector<48xf32>
    %192 = vector.shape_cast %191 : vector<48xf32> to vector<48x1xf32>
    %193 = arith.mulf %159, %171 : vector<48x32xf32>
    %cst_29 = arith.constant dense<0.000000e+00> : vector<48xf32>
    %194 = vector.multi_reduction <add>, %193, %cst_29 [1] : vector<48x32xf32> to vector<48xf32>
    %195 = vector.shape_cast %194 : vector<48xf32> to vector<48x1xf32>
    %196 = arith.mulf %159, %174 : vector<48x32xf32>
    %cst_30 = arith.constant dense<0.000000e+00> : vector<48xf32>
    %197 = vector.multi_reduction <add>, %196, %cst_30 [1] : vector<48x32xf32> to vector<48xf32>
    %198 = vector.shape_cast %197 : vector<48xf32> to vector<48x1xf32>
    %199 = arith.mulf %159, %177 : vector<48x32xf32>
    %cst_31 = arith.constant dense<0.000000e+00> : vector<48xf32>
    %200 = vector.multi_reduction <add>, %199, %cst_31 [1] : vector<48x32xf32> to vector<48xf32>
    %201 = vector.shape_cast %200 : vector<48xf32> to vector<48x1xf32>
    %202 = arith.mulf %159, %180 : vector<48x32xf32>
    %cst_32 = arith.constant dense<0.000000e+00> : vector<48xf32>
    %203 = vector.multi_reduction <add>, %202, %cst_32 [1] : vector<48x32xf32> to vector<48xf32>
    %204 = vector.shape_cast %203 : vector<48xf32> to vector<48x1xf32>
    %205 = arith.mulf %159, %183 : vector<48x32xf32>
    %cst_33 = arith.constant dense<0.000000e+00> : vector<48xf32>
    %206 = vector.multi_reduction <add>, %205, %cst_33 [1] : vector<48x32xf32> to vector<48xf32>
    %207 = vector.shape_cast %206 : vector<48xf32> to vector<48x1xf32>
    %208 = arith.maximumf %186, %189 : vector<48x1xf32>
    %209 = arith.maximumf %208, %192 : vector<48x1xf32>
    %210 = arith.maximumf %209, %195 : vector<48x1xf32>
    %211 = arith.maximumf %210, %198 : vector<48x1xf32>
    %212 = arith.maximumf %211, %201 : vector<48x1xf32>
    %213 = arith.maximumf %212, %204 : vector<48x1xf32>
    %214 = arith.maximumf %213, %207 : vector<48x1xf32>
    %215 = arith.subf %186, %214 : vector<48x1xf32>
    %216 = math.exp %215 : vector<48x1xf32>
    %217 = arith.subf %189, %214 : vector<48x1xf32>
    %218 = math.exp %217 : vector<48x1xf32>
    %219 = arith.subf %192, %214 : vector<48x1xf32>
    %220 = math.exp %219 : vector<48x1xf32>
    %221 = arith.subf %195, %214 : vector<48x1xf32>
    %222 = math.exp %221 : vector<48x1xf32>
    %223 = arith.subf %198, %214 : vector<48x1xf32>
    %224 = math.exp %223 : vector<48x1xf32>
    %225 = arith.subf %201, %214 : vector<48x1xf32>
    %226 = math.exp %225 : vector<48x1xf32>
    %227 = arith.subf %204, %214 : vector<48x1xf32>
    %228 = math.exp %227 : vector<48x1xf32>
    %229 = arith.subf %207, %214 : vector<48x1xf32>
    %230 = math.exp %229 : vector<48x1xf32>
    %231 = arith.addf %216, %218 : vector<48x1xf32>
    %232 = arith.addf %231, %220 : vector<48x1xf32>
    %233 = arith.addf %232, %222 : vector<48x1xf32>
    %234 = arith.addf %233, %224 : vector<48x1xf32>
    %235 = arith.addf %234, %226 : vector<48x1xf32>
    %236 = arith.addf %235, %228 : vector<48x1xf32>
    %237 = arith.addf %236, %230 : vector<48x1xf32>
    %cst_34 = arith.constant 1.000000e+00 : f32
    %238 = vector.broadcast %cst_34 : f32 to vector<48x1xf32>
    %239 = arith.divf %238, %237 : vector<48x1xf32>
    %240 = arith.mulf %216, %239 : vector<48x1xf32>
    %241 = vector.broadcast %240 : vector<48x1xf32> to vector<48x32xf32>
    %242 = arith.mulf %241, %162 : vector<48x32xf32>
    %243 = arith.mulf %218, %239 : vector<48x1xf32>
    %244 = vector.broadcast %243 : vector<48x1xf32> to vector<48x32xf32>
    %245 = arith.mulf %244, %165 : vector<48x32xf32>
    %246 = arith.addf %242, %245 : vector<48x32xf32>
    %247 = arith.mulf %220, %239 : vector<48x1xf32>
    %248 = vector.broadcast %247 : vector<48x1xf32> to vector<48x32xf32>
    %249 = arith.mulf %248, %168 : vector<48x32xf32>
    %250 = arith.addf %246, %249 : vector<48x32xf32>
    %251 = arith.mulf %222, %239 : vector<48x1xf32>
    %252 = vector.broadcast %251 : vector<48x1xf32> to vector<48x32xf32>
    %253 = arith.mulf %252, %171 : vector<48x32xf32>
    %254 = arith.addf %250, %253 : vector<48x32xf32>
    %255 = arith.mulf %224, %239 : vector<48x1xf32>
    %256 = vector.broadcast %255 : vector<48x1xf32> to vector<48x32xf32>
    %257 = arith.mulf %256, %174 : vector<48x32xf32>
    %258 = arith.addf %254, %257 : vector<48x32xf32>
    %259 = arith.mulf %226, %239 : vector<48x1xf32>
    %260 = vector.broadcast %259 : vector<48x1xf32> to vector<48x32xf32>
    %261 = arith.mulf %260, %177 : vector<48x32xf32>
    %262 = arith.addf %258, %261 : vector<48x32xf32>
    %263 = arith.mulf %228, %239 : vector<48x1xf32>
    %264 = vector.broadcast %263 : vector<48x1xf32> to vector<48x32xf32>
    %265 = arith.mulf %264, %180 : vector<48x32xf32>
    %266 = arith.addf %262, %265 : vector<48x32xf32>
    %267 = arith.mulf %230, %239 : vector<48x1xf32>
    %268 = vector.broadcast %267 : vector<48x1xf32> to vector<48x32xf32>
    %269 = arith.mulf %268, %183 : vector<48x32xf32>
    %270 = arith.addf %266, %269 : vector<48x32xf32>
    %c0_35 = arith.constant 0 : index
    %c0_36 = arith.constant 0 : index
    %271 = vector.load %arg4[%c0_35, %c0_36] : memref<32x16xf32, #tpu.memory_space<vmem>>, vector<32x16xf32>
    %cst_37 = arith.constant dense<0.000000e+00> : vector<48x16xf32>
    %272 = tpu.matmul %159, %271, %cst_37 {dimension_numbers = #tpu.dot_dimension_numbers<[1], [0], [0], [1], [0, 0, 1, 1], [], []>} : vector<48x32xf32>, vector<32x16xf32>, vector<48x16xf32> -> vector<48x16xf32>
    %c0_38 = arith.constant 0 : index
    %c0_39 = arith.constant 0 : index
    %273 = vector.load %arg5[%c0_38, %c0_39] : memref<32x16xf32, #tpu.memory_space<vmem>>, vector<32x16xf32>
    %cst_40 = arith.constant dense<0.000000e+00> : vector<48x16xf32>
    %274 = tpu.matmul %270, %273, %cst_40 {dimension_numbers = #tpu.dot_dimension_numbers<[1], [0], [0], [1], [0, 0, 1, 1], [], []>} : vector<48x32xf32>, vector<32x16xf32>, vector<48x16xf32> -> vector<48x16xf32>
    %275 = arith.addf %272, %274 : vector<48x16xf32>
    %c0_41 = arith.constant 0 : index
    %c0_42 = arith.constant 0 : index
    %276 = vector.load %arg6[%c0_41, %c0_42] : memref<1x16xf32, #tpu.memory_space<vmem>>, vector<1x16xf32>
    %277 = vector.broadcast %276 : vector<1x16xf32> to vector<48x16xf32>
    %278 = arith.addf %275, %277 : vector<48x16xf32>
    %cst_43 = arith.constant dense<0xFF800000> : vector<48xf32>
    %279 = vector.multi_reduction <maximumf>, %278, %cst_43 [1] : vector<48x16xf32> to vector<48xf32>
    %280 = vector.shape_cast %279 : vector<48xf32> to vector<48x1xf32>
    %281 = vector.broadcast %280 : vector<48x1xf32> to vector<48x16xf32>
    %282 = arith.subf %278, %281 : vector<48x16xf32>
    %283 = math.exp %282 : vector<48x16xf32>
    %cst_44 = arith.constant dense<0.000000e+00> : vector<48xf32>
    %284 = vector.multi_reduction <add>, %283, %cst_44 [1] : vector<48x16xf32> to vector<48xf32>
    %285 = vector.shape_cast %284 : vector<48xf32> to vector<48x1xf32>
    %286 = math.log %285 : vector<48x1xf32>
    %287 = arith.addf %280, %286 : vector<48x1xf32>
    %288 = vector.broadcast %287 : vector<48x1xf32> to vector<48x16xf32>
    %289 = arith.subf %278, %288 : vector<48x16xf32>
    %290 = vector.shape_cast %289 : vector<48x16xf32> to vector<6x8x16xf32>
    %c0_45 = arith.constant 0 : index
    %c0_46 = arith.constant 0 : index
    %c0_47 = arith.constant 0 : index
    %291 = vector.load %arg7[%c0_45, %c0_46, %c0_47] : memref<6x8x16xf32, #tpu.memory_space<vmem>>, vector<6x8x16xf32>
    tpu.vector_store %arg7[%c0_45, %c0_46, %c0_47], %290 {strides = array<i32>} : memref<6x8x16xf32, #tpu.memory_space<vmem>>, vector<6x8x16xf32>,
    return
  }
}

</mosaic_0001>

<bundles_post_ra>
// kernel: tpu_custom_call.1
= control target key start
LH: loop header
LB: loop body
LE: loop exit
PB: predicated region body
PF: predicated region fallthrough
CT: control target
= control target key end

     0   :  { %12 = vsyncpa [#allocation3], 0  ;;  %s3413_s0 = inlined_call_operand.hbm [shape: s32[8,6], index: 0, kind: input, shape index: {}]   ;;  %s3414_s1 = inlined_call_operand.vmem [shape: f32[8,8,32], index: 1, kind: input, shape index: {}]   ;;  %s3415_s2 = inlined_call_operand.hbm [shape: f32[16,96], index: 2, kind: input, shape index: {}]   ;;  %s3416_s3 = inlined_call_operand.vmem [shape: f32[32,96], index: 3, kind: input, shape index: {}]   ;;  %s3417_s4 = inlined_call_operand.vmem [shape: f32[32,16], index: 4, kind: input, shape index: {}]   ;;  %s3418_s5 = inlined_call_operand.vmem [shape: f32[32,16], index: 5, kind: input, shape index: {}]   ;;  %s3419_s6 = inlined_call_operand.vmem [shape: f32[1,16], index: 6, kind: input, shape index: {}]   ;;  %s3420_s7 = inlined_call_operand.hbm [shape: f32[6,8,16], index: 7, kind: output, shape index: {}]  }
   0x1   :  { %13 = vsyncpa [#allocation6], 0 }
   0x2   :  { %14 = vsyncpa [#allocation4], 0  ;;  %s2400_s24 = smov [#allocation2]   ;;  %s2401_s26 = smov [#allocation5]  }
   0x3   :  { %s21_s25 = sshll.u32 %s2400_s24, 4  ;;  %s32_s27 = sshll.u32 %s2401_s26, 4  ;;  %s22_s25 = int_to_ptr.vmem [resolvable:$true] %s21_s25  ;;  %s33_s27 = int_to_ptr.vmem [resolvable:$true] %s32_s27 }
   0x4   :  { %s2342_s28 = scalar_lea.vmem %s22_s25, 128  ;;  %p2347_p1 = scmp.lt.s32.totalorder %s22_s25, %s22_s25 }
   0x5   :  { %p2343_p0 = scmp.ne.s32.totalorder %s22_s25, %s2342_s28  ;;  %p2348_p2 = scmp.lt.s32.totalorder %s2342_s28, %s2342_s28 }
   0x7   :  { %p2349_p3 = por %p2348_p2, %p2347_p1 }
   0x9   :  { %p2350_p4 = pnand %p2349_p3, %p2343_p0 }
   0xb   :  { %2353 = shalt.err (!%p2350_p4)
}
   0xc   :  { %24 = dma.hbm_to_vmem [thread:$0]  %s3413_s0, 128, %s22_s25, [#allocation3]  }
   0xd   :  { %s2362_s8 = scalar_lea.vmem %s33_s27, 256  ;;  %p2367_p6 = scmp.lt.s32.totalorder %s33_s27, %s33_s27 }
   0xe   :  { %p2363_p5 = scmp.ne.s32.totalorder %s33_s27, %s2362_s8  ;;  %p2368_p7 = scmp.lt.s32.totalorder %s2362_s8, %s2362_s8 }
  0x10   :  { %p2369_p8 = por %p2368_p7, %p2367_p6 }
  0x12   :  { %p2370_p9 = pnand %p2369_p8, %p2363_p5 }
  0x14   :  { %2373 = shalt.err (!%p2370_p9)
}
  0x15   :  { %s2402_s9 = smov 128   ;;  %s2403_s10 = smov 8  }
  0x16   :  { %38 = dma.hbm_to_vmem [thread:$0]  %s3415_s2, 256, %s33_s27, [#allocation6], %s2402_s9, %s2402_s9, %s2403_s10  }
  0x17   :  { %2394 = dma.done.wait [#allocation3], 128  }
  0x18   :  { %2395 = vsyncadd [#allocation3], 4294967168 }
  0x19   :  { %2396 = dma.done.wait [#allocation6], 256  }
  0x1a   :  { %2397 = vsyncadd [#allocation6], 4294967040  ;;  %v2404_v0 = vmov 4   ;;  %v2405_v1 = vmov 0   ;;  %v2464_v2 = vld [vmem:[#allocation2] sm:$0xff]  ;;  %v62_v3 = vld [vmem:[#allocation5 + $0x8] sm:$0xff]  ;;  %v68_v8 = vlaneseq }
  0x1b   :  { %2139 = vset.pattern.permute.xlu0 %v2404_v0  ;;  %2141 = vset.pattern.permute.xlu1 %v2405_v1  ;;  %v61_v4 = vld [vmem:[#allocation5] sm:$0xff]  ;;  %v2406_v5 = vmov 5   ;;  %v2407_v6 = vmov 1   ;;  %v2408_v7 = vmov 0.0   ;;  %vm106_vm0 = vcmask 130048   ;;  %v2486_v16 = vld [vmem:[%s3416_s3 + $0x18] sm:$0xff] }
  0x1c   :  { %95 = vperm.xlu0 %2139, %v2464_v2   ;;  %71 = vperm.xlu1 %2141, %v2464_v2   ;;  %v2473_v9 = vand.u32 127, %v68_v8  ;;  %v2494_v19 = vld [vmem:[%s3416_s3 + $0x10] sm:$0xff]  ;;  %vm2409_vm5 = vmmov 0   ;;  %v2504_v20 = vld [vmem:[%s3416_s3 + $0x8] sm:$0xff]  ;;  %v2513_v21 = vld [vmem:[%s3416_s3] sm:$0xff]  ;;  %vm220_vm6 = vcmask 261120  }
  0x1d   :  { %2120 = vmatprep.subr.mxu1 %v62_v3  ;;  %2007 = vmatprep.subr.mxu0 %v62_v3  ;;  %v2520_v22 = vld [vmem:[%s3414_s1 + $0x38] sm:$0xff]  ;;  %s2410_s3 = smov 96   ;;  %v2411_v31 = vmov 2   ;;  %v2412_v32 = vmov 3   ;;  %s2413_s21 = smov 64  }
  0x1e   :  { %2122 = vmatpush3.msra.mxu1 %v62_v3  ;;  %2008 = vmatpush3.msra.mxu0 %v62_v3 }
  0x1f   :  { %2121 = vmatprep.subr.mxu1 %v61_v4  ;;  %2009 = vmatprep.subr.mxu0 %v61_v4 }
  0x20   :  { %2140 = vset.pattern.permute.xlu0 %v2406_v5  ;;  %2142 = vset.pattern.permute.xlu1 %v2407_v6 }
  0x21   :  { %101 = vperm.xlu0 %2140, %v2464_v2   ;;  %77 = vperm.xlu1 %2142, %v2464_v2  }
  0x22   :  { %2123 = vmatpush3.msra.mxu1 %v61_v4  ;;  %2010 = vmatpush3.msra.mxu0 %v61_v4 }
  0x23   :  { %2020 = vmatprep.subr.mxu1 %v2408_v7  ;;  %2031 = vmatprep.subr.mxu0 %v2408_v7 }
  0x25   :  { %2143 = vset.pattern.permute.xlu1 %v2411_v31  ;;  %2144 = vset.pattern.permute.xlu0 %v2412_v32 }
  0x97   :  { %v96_v10 = vpop.permute.xlu0 %95  ;;  %v72_v11 = vpop.permute.xlu1 %71 }
  0x98   :  { %vm97_vm1 = vcmp.eq.s32.totalorder %v96_v10, %v2473_v9  ;;  %vm73_vm2 = vcmp.eq.s32.totalorder %v72_v11, %v2473_v9 }
  0x99   :  { %v1916_v12 = vsel %vm97_vm1, 1.0, %v2408_v7  ;;  %v1912_v13 = vsel %vm73_vm2, 1.0, %v2408_v7 }
  0x9a   :  { %2017 = vmatprep.mubr.msk.f32.mxu1 %vm106_vm0, %v1916_v12  ;;  %2011 = vmatprep.mubr.msk.f32.mxu0 %vm106_vm0, %v1912_v13 }
  0x9c   :  { %v102_v14 = vpop.permute.xlu0 %101  ;;  %v78_v15 = vpop.permute.xlu1 %77 }
  0x9d   :  { %vm103_vm3 = vcmp.eq.s32.totalorder %v102_v14, %v2473_v9  ;;  %vm79_vm4 = vcmp.eq.s32.totalorder %v78_v15, %v2473_v9 }
  0x9e   :  { %v1917_v17 = vsel %vm103_vm3, 1.0, %v2408_v7  ;;  %v1913_v18 = vsel %vm79_vm4, 1.0, %v2408_v7 }
  0x9f   :  { %2018 = vmatmul.mubr.msk.f32.vlgmr.msra.gmra.mxu1 %vm106_vm0, %v1917_v17  ;;  %2012 = vmatmul.mubr.msk.f32.vlgmr.msra.gmra.mxu0 %vm106_vm0, %v1913_v18 }
  0xa0   :  { %2021 = vmatpush3.msra.mxu1 %v2486_v16  ;;  %2028 = vmatprep.mubr.msk.f32.mxu1 %vm2409_vm5, %v2408_v7 }
  0xa1   :  { %2022 = vmatprep.subr.mxu1 %v2408_v7  ;;  %2032 = vmatpush3.msra.mxu0 %v2486_v16 }
  0xa2   :  { %2023 = vmatpush3.msra.mxu1 %v2494_v19  ;;  %2033 = vmatprep.subr.mxu0 %v2408_v7 }
  0xa3   :  { %2024 = vmatprep.subr.mxu1 %v2408_v7  ;;  %2034 = vmatpush3.msra.mxu0 %v2494_v19 }
  0xa4   :  { %2025 = vmatpush3.msra.mxu1 %v2504_v20  ;;  %2035 = vmatprep.subr.mxu0 %v2408_v7 }
  0xa5   :  { %2026 = vmatprep.subr.mxu1 %v2408_v7  ;;  %2036 = vmatpush3.msra.mxu0 %v2504_v20 }
  0xa6   :  { %2027 = vmatpush3.msra.mxu1 %v2513_v21  ;;  %2037 = vmatprep.subr.mxu0 %v2408_v7 }
  0xa7   :  { %2029 = vmatmul.mubr.msk.f32.vlgmr.msra.gmra.mxu1 %vm220_vm6, %v2520_v22  ;;  %2038 = vmatpush3.msra.mxu0 %v2513_v21 }
  0xa8   :  { %2042 = vmatprep.subr.mxu1 %v2408_v7  ;;  %2050 = vmatprep.mubr.msk.f32.mxu1 %vm2409_vm5, %v2408_v7 }
  0xa9   :  { %2043 = vmatpush3.msra.mxu1 %v2486_v16  ;;  %2053 = vmatprep.subr.mxu0 %v2408_v7 }
  0xaa   :  { %2044 = vmatprep.subr.mxu1 %v2408_v7 }
  0xab   :  { %2045 = vmatpush3.msra.mxu1 %v2494_v19 }
  0xac   :  { %2046 = vmatprep.subr.mxu1 %v2408_v7 }
  0xad   :  { %2047 = vmatpush3.msra.mxu1 %v2504_v20 }
  0xae   :  { %2048 = vmatprep.subr.mxu1 %v2408_v7 }
  0xaf   :  { %2049 = vmatpush3.msra.mxu1 %v2513_v21 }
  0xb0   :  { %2064 = vmatprep.subr.mxu1 %v2408_v7 }
 0x15f   :  { %v2542_v23 = vpop.f32.mrf.mxu1  ;;  %v2013_v24 = vpop.f32.mrf.mxu0 }
 0x161   :  { %v2544_v25 = vpop.f32.mrf.mxu1  ;;  %v191_v26 = vpop.f32.mrf.mxu0 }
 0x167   :  { %v290_v27 = vpop.f32.mrf.mxu1 }
 0x168   :  { %v294_v28 = vadd.f32 %v290_v27, %v191_v26 }
 0x169   :  { %v2030_v29 = vpop.f32.mrf.mxu1 }
 0x16a   :  { %2146 = vtanh.f32 %v294_v28  ;;  %v1925_v33 = vmul.f32 -1.442695, %v294_v28 }
 0x16c   :  { %2148 = vpow2.f32 %v1925_v33 }
 0x177   :  { %v2147_v30 = vpop.eup %2146 }
 0x178   :  { %303 = vrot.lane.b32.xlu1 %v2147_v30, %s2410_s3 }
 0x179   :  { %v2149_v34 = vpop.eup %2148 }
 0x17a   :  { %v298_v35 = vadd.f32 1.0, %v2149_v34 }
 0x17c   :  { %83 = vperm.xlu1 %2143, %v2464_v2   ;;  %2150 = vrcp.f32 %v298_v35 }
 0x189   :  { %v2151_v36 = vpop.eup %2150 }
 0x1ea   :  { %v304_v37 = vpop.permute.xlu1 %303 }
 0x1eb   :  { %v306_v38 = vmul.f32 %v2151_v36, %v304_v37 }
 0x1ed   :  { %2152 = vtanh.f32 %v306_v38 }
 0x1f7   :  { %v84_v39 = vpop.permute.xlu1 %83 }
 0x1f8   :  { %vm85_vm7 = vcmp.eq.s32.totalorder %v84_v39, %v2473_v9 }
 0x1f9   :  { %v1914_v41 = vsel %vm85_vm7, 1.0, %v2408_v7 }
 0x1fa   :  { %v2153_v40 = vpop.eup %2152  ;;  %2014 = vmatprep.mubr.msk.f32.mxu0 %vm106_vm0, %v1914_v41  ;;  %v56_v41 = vld [vmem:[%s3414_s1 + $0x18] sm:$0xff] }
 0x1fb   :  { %309 = vrot.lane.b32.xlu0 %v2153_v40, %s2413_s21 }
 0x1ff   :  { %89 = vperm.xlu0 %2144, %v2464_v2  }
 0x203   :  { %2145 = vset.pattern.permute.xlu0 %v2406_v5 }
 0x26d   :  { %v310_v42 = vpop.permute.xlu0 %309 }
 0x26e   :  { %v2554_v43 = vmul.f32 %v2151_v36, %v310_v42  ;;  %v59_v42 = vld [vmem:[%s3414_s1 + $0x30] sm:$0xff] }
 0x270   :  { %314 = vrot.lane.b32.xlu1 %v2554_v43, %s2413_s21 }
 0x27a   :  { %v90_v44 = vpop.permute.xlu0 %89 }
 0x27b   :  { %vm91_vm8 = vcmp.eq.s32.totalorder %v90_v44, %v2473_v9  ;;  %v1579_v44 = vld [vmem:[%s3417_s4 + $0x18] sm:$0xff] }
 0x27c   :  { %v1915_v45 = vsel %vm91_vm8, 1.0, %v2408_v7 }
 0x27d   :  { %2015 = vmatmul.mubr.msk.f32.gmra.mxu0 %vm106_vm0, %v1915_v45 }
 0x27e   :  { %2039 = vmatprep.mubr.msk.f32.mxu0 %vm2409_vm5, %v2408_v7 }
 0x2e2   :  { %v2563_v46 = vpop.permute.xlu1 %314 }
 0x2e3   :  { %2040 = vmatmul.mubr.msk.f32.vlgmr.msra.gmra.mxu0 %vm220_vm6, %v2563_v46 }
 0x2e4   :  { %2054 = vmatpush3.msra.mxu0 %v2486_v16  ;;  %2061 = vmatprep.mubr.msk.f32.mxu0 %vm2409_vm5, %v2408_v7 }
 0x2e5   :  { %2055 = vmatprep.subr.mxu0 %v2408_v7 }
 0x2e6   :  { %2056 = vmatpush3.msra.mxu0 %v2494_v19 }
 0x2e7   :  { %2057 = vmatprep.subr.mxu0 %v2408_v7 }
 0x2e8   :  { %2058 = vmatpush3.msra.mxu0 %v2504_v20 }
 0x2e9   :  { %2059 = vmatprep.subr.mxu0 %v2408_v7 }
 0x2ea   :  { %2060 = vmatpush3.msra.mxu0 %v2513_v21 }
 0x2eb   :  { %2075 = vmatprep.subr.mxu0 %v2408_v7 }
 0x33d   :  { %v2577_v47 = vpop.f32.mrf.mxu0 }
 0x33f   :  { %v201_v48 = vpop.f32.mrf.mxu0 }
 0x3a3   :  { %v384_v49 = vpop.f32.mrf.mxu0 }
 0x3a4   :  { %v388_v50 = vadd.f32 %v2013_v24, %v384_v49  ;;  %v55_v49 = vld [vmem:[%s3414_s1 + $0x10] sm:$0xff] }
 0x3a5   :  { %v2041_v51 = vpop.f32.mrf.mxu0 }
 0x3a6   :  { %2154 = vtanh.f32 %v388_v50  ;;  %v1927_v53 = vmul.f32 -1.442695, %v388_v50  ;;  %v57_v50 = vld [vmem:[%s3414_s1 + $0x20] sm:$0xff]  ;;  %v58_v51 = vld [vmem:[%s3414_s1 + $0x28] sm:$0xff] }
 0x3a8   :  { %2156 = vpow2.f32 %v1927_v53 }
 0x3b3   :  { %v2155_v52 = vpop.eup %2154 }
 0x3b4   :  { %397 = vrot.lane.b32.xlu1 %v2155_v52, %s2410_s3 }
 0x3b5   :  { %v2157_v54 = vpop.eup %2156 }
 0x3b6   :  { %v392_v55 = vadd.f32 1.0, %v2157_v54 }
 0x3b8   :  { %2158 = vrcp.f32 %v392_v55 }
 0x3c5   :  { %v2159_v56 = vpop.eup %2158 }
 0x426   :  { %v398_v57 = vpop.permute.xlu1 %397 }
 0x427   :  { %v400_v58 = vmul.f32 %v2159_v56, %v398_v57 }
 0x429   :  { %2160 = vtanh.f32 %v400_v58  ;;  %v1576_v58 = vld [vmem:[%s3417_s4] sm:$0xff] }
 0x436   :  { %v2161_v59 = vpop.eup %2160 }
 0x437   :  { %403 = vrot.lane.b32.xlu0 %v2161_v59, %s2413_s21 }
 0x4a9   :  { %v404_v60 = vpop.permute.xlu0 %403 }
 0x4aa   :  { %v2581_v61 = vmul.f32 %v2159_v56, %v404_v60  ;;  %v1578_v56 = vld [vmem:[%s3417_s4 + $0x10] sm:$0xff] }
 0x4ac   :  { %408 = vrot.lane.b32.xlu1 %v2581_v61, %s2413_s21 }
 0x51e   :  { %v2585_v62 = vpop.permute.xlu1 %408 }
 0x51f   :  { %2051 = vmatmul.mubr.msk.f32.vlgmr.msra.gmra.mxu1 %vm220_vm6, %v2585_v62 }
 0x520   :  { %2065 = vmatpush3.msra.mxu1 %v2486_v16  ;;  %2072 = vmatprep.mubr.msk.f32.mxu1 %vm2409_vm5, %v2408_v7 }
 0x521   :  { %2066 = vmatprep.subr.mxu1 %v2408_v7 }
 0x522   :  { %2067 = vmatpush3.msra.mxu1 %v2494_v19 }
 0x523   :  { %2068 = vmatprep.subr.mxu1 %v2408_v7 }
 0x524   :  { %2069 = vmatpush3.msra.mxu1 %v2504_v20 }
 0x525   :  { %2070 = vmatprep.subr.mxu1 %v2408_v7 }
 0x526   :  { %2071 = vmatpush3.msra.mxu1 %v2513_v21 }
 0x5df   :  { %v478_v63 = vpop.f32.mrf.mxu1 }
 0x5e0   :  { %v482_v0 = vadd.f32 %v478_v63, %v201_v48  ;;  %v53_v48 = vld [vmem:[%s3414_s1] sm:$0xff] }
 0x5e1   :  { %v2052_v1 = vpop.f32.mrf.mxu1 }
 0x5e2   :  { %2162 = vtanh.f32 %v482_v0  ;;  %v1929_v3 = vmul.f32 -1.442695, %v482_v0 }
 0x5e4   :  { %2164 = vpow2.f32 %v1929_v3 }
 0x5ef   :  { %v2163_v2 = vpop.eup %2162 }
 0x5f0   :  { %491 = vrot.lane.b32.xlu0 %v2163_v2, %s2410_s3 }
 0x5f1   :  { %v2165_v4 = vpop.eup %2164 }
 0x5f2   :  { %v486_v5 = vadd.f32 1.0, %v2165_v4 }
 0x5f4   :  { %2166 = vrcp.f32 %v486_v5 }
 0x601   :  { %v2167_v6 = vpop.eup %2166 }
 0x662   :  { %v492_v8 = vpop.permute.xlu0 %491 }
 0x663   :  { %v494_v9 = vmul.f32 %v2167_v6, %v492_v8 }
 0x665   :  { %2168 = vtanh.f32 %v494_v9 }
 0x672   :  { %v2169_v10 = vpop.eup %2168 }
 0x673   :  { %497 = vrot.lane.b32.xlu1 %v2169_v10, %s2413_s21 }
 0x6e5   :  { %v498_v11 = vpop.permute.xlu1 %497 }
 0x6e6   :  { %v2600_v12 = vmul.f32 %v2167_v6, %v498_v11 }
 0x6e8   :  { %502 = vrot.lane.b32.xlu0 %v2600_v12, %s2413_s21 }
 0x75a   :  { %v2604_v13 = vpop.permute.xlu0 %502 }
 0x75b   :  { %2062 = vmatmul.mubr.msk.f32.vlgmr.msra.gmra.mxu0 %vm220_vm6, %v2604_v13 }
 0x75c   :  { %2076 = vmatpush3.msra.mxu0 %v2486_v16  ;;  %2083 = vmatprep.mubr.msk.f32.mxu0 %vm2409_vm5, %v2408_v7 }
 0x75d   :  { %2077 = vmatprep.subr.mxu0 %v2408_v7 }
 0x75e   :  { %2078 = vmatpush3.msra.mxu0 %v2494_v19 }
 0x75f   :  { %2079 = vmatprep.subr.mxu0 %v2408_v7 }
 0x760   :  { %2080 = vmatpush3.msra.mxu0 %v2504_v20 }
 0x761   :  { %2081 = vmatprep.subr.mxu0 %v2408_v7 }
 0x762   :  { %2082 = vmatpush3.msra.mxu0 %v2513_v21 }
 0x763   :  { %2103 = vmatprep.subr.mxu0 %v1579_v44 }
 0x81b   :  { %v572_v14 = vpop.f32.mrf.mxu0 }
 0x81c   :  { %v576_v15 = vadd.f32 %v2577_v47, %v572_v14 }
 0x81d   :  { %v2063_v17 = vpop.f32.mrf.mxu0 }
 0x81e   :  { %2170 = vtanh.f32 %v576_v15  ;;  %v1931_v18 = vmul.f32 -1.442695, %v576_v15 }
 0x820   :  { %2172 = vpow2.f32 %v1931_v18 }
 0x82b   :  { %v2171_v16 = vpop.eup %2170 }
 0x82c   :  { %585 = vrot.lane.b32.xlu1 %v2171_v16, %s2410_s3 }
 0x82d   :  { %v2173_v24 = vpop.eup %2172 }
 0x82e   :  { %v580_v19 = vadd.f32 1.0, %v2173_v24 }
 0x830   :  { %2174 = vrcp.f32 %v580_v19 }
 0x83d   :  { %v2175_v26 = vpop.eup %2174 }
 0x89e   :  { %v586_v27 = vpop.permute.xlu1 %585 }
 0x89f   :  { %v588_v20 = vmul.f32 %v2175_v26, %v586_v27 }
 0x8a1   :  { %2176 = vtanh.f32 %v588_v20 }
 0x8ae   :  { %v2177_v7 = vpop.eup %2176 }
 0x8af   :  { %591 = vrot.lane.b32.xlu0 %v2177_v7, %s2413_s21 }
 0x921   :  { %v592_v21 = vpop.permute.xlu0 %591 }
 0x922   :  { %v2620_v28 = vmul.f32 %v2175_v26, %v592_v21 }
 0x924   :  { %596 = vrot.lane.b32.xlu1 %v2620_v28, %s2413_s21 }
 0x996   :  { %v2624_v29 = vpop.permute.xlu1 %596 }
 0x997   :  { %2073 = vmatmul.mubr.msk.f32.vlgmr.msra.gmra.mxu1 %vm220_vm6, %v2624_v29 }
 0xa57   :  { %v666_v30 = vpop.f32.mrf.mxu1 }
 0xa58   :  { %v670_v31 = vadd.f32 %v666_v30, %v2544_v25  ;;  %v54_v25 = vld [vmem:[%s3414_s1 + $0x8] sm:$0xff] }
 0xa59   :  { %v2074_v32 = vpop.f32.mrf.mxu1 }
 0xa5a   :  { %2178 = vtanh.f32 %v670_v31  ;;  %v1933_v34 = vmul.f32 -1.442695, %v670_v31 }
 0xa5c   :  { %2180 = vpow2.f32 %v1933_v34 }
 0xa67   :  { %v2179_v33 = vpop.eup %2178 }
 0xa68   :  { %679 = vrot.lane.b32.xlu0 %v2179_v33, %s2410_s3 }
 0xa69   :  { %v2181_v35 = vpop.eup %2180 }
 0xa6a   :  { %v674_v36 = vadd.f32 1.0, %v2181_v35 }
 0xa6c   :  { %2182 = vrcp.f32 %v674_v36 }
 0xa79   :  { %v2183_v37 = vpop.eup %2182 }
 0xada   :  { %v680_v38 = vpop.permute.xlu0 %679 }
 0xadb   :  { %v682_v39 = vmul.f32 %v2183_v37, %v680_v38 }
 0xadd   :  { %2184 = vtanh.f32 %v682_v39 }
 0xaea   :  { %v2185_v40 = vpop.eup %2184 }
 0xaeb   :  { %685 = vrot.lane.b32.xlu1 %v2185_v40, %s2413_s21 }
 0xaef   :  { %836 = vrot.lane.b32.xlu1 %v54_v25, %s2413_s21 }
 0xaf3   :  { %940 = vrot.lane.b32.xlu1 %v56_v41, %s2413_s21 }
 0xaf7   :  { %1096 = vrot.lane.b32.xlu1 %v59_v42, %s2413_s21 }
 0xb5d   :  { %v686_v45 = vpop.permute.xlu1 %685 }
 0xb5e   :  { %v2646_v47 = vmul.f32 %v2183_v37, %v686_v45 }
 0xb60   :  { %690 = vrot.lane.b32.xlu0 %v2646_v47, %s2413_s21 }
 0xb61   :  { %v2666_v52 = vpop.permute.xlu1 %836 }
 0xb62   :  { %v839_v53 = vmul.f32 %v2666_v52, %v2554_v43  ;;  %v840_v54 = vmul.f32 %v2666_v52, %v2581_v61  ;;  %v841_v0 = vmul.f32 %v2666_v52, %v2600_v12  ;;  %v842_v8 = vmul.f32 %v2666_v52, %v2620_v28 }
 0xb63   :  { %v843_v45 = vmul.f32 %v2666_v52, %v2646_v47 }
 0xb64   :  { %784 = vrot.lane.b32.xlu0 %v53_v48, %s2413_s21 }
 0xb65   :  { %v2718_v3 = vpop.permute.xlu1 %940 }
 0xb66   :  { %v944_v4 = vmul.f32 %v2718_v3, %v2581_v61  ;;  %v943_v5 = vmul.f32 %v2718_v3, %v2554_v43  ;;  %v945_v17 = vmul.f32 %v2718_v3, %v2600_v12  ;;  %v946_v18 = vmul.f32 %v2718_v3, %v2620_v28 }
 0xb68   :  { %888 = vrot.lane.b32.xlu0 %v55_v49, %s2413_s21 }
 0xb69   :  { %v2760_v19 = vpop.permute.xlu1 %1096 }
 0xb6a   :  { %v1099_v26 = vmul.f32 %v2760_v19, %v2554_v43  ;;  %v1100_v27 = vmul.f32 %v2760_v19, %v2581_v61  ;;  %v1101_v31 = vmul.f32 %v2760_v19, %v2600_v12 }
 0xb6c   :  { %992 = vrot.lane.b32.xlu0 %v57_v50, %s2413_s21  ;;  %v1103_v50 = vmul.f32 %v2760_v19, %v2646_v47 }
 0xb70   :  { %1044 = vrot.lane.b32.xlu0 %v58_v51, %s2413_s21 }
 0xb74   :  { %1147 = vrot.lane.b32.xlu0 %v2520_v22, %s2413_s21  ;;  %v1577_v22 = vld [vmem:[%s3417_s4 + $0x8] sm:$0xff] }
 0xb78   :  { %851 = vrot.lane.b32.xlu0 %v839_v53, %s2413_s21 }
 0xb7c   :  { %853 = vrot.lane.b32.xlu0 %v840_v54, %s2413_s21 }
 0xbd2   :  { %v691_v55 = vpop.permute.xlu0 %690 }
 0xbd3   :  { %2084 = vmatmul.mubr.msk.f32.vlgmr.msra.gmra.mxu0 %vm220_vm6, %v691_v55 }
 0xbd4   :  { %2104 = vmatpush3.msra.mxu0 %v1579_v44  ;;  %2111 = vmatprep.mubr.msk.f32.mxu0 %vm220_vm6, %v2563_v46  ;;  %v947_v44 = vmul.f32 %v2718_v3, %v2646_v47 }
 0xbd5   :  { %2105 = vmatprep.subr.mxu0 %v1578_v56 }
 0xbd6   :  { %2106 = vmatpush3.msra.mxu0 %v1578_v56  ;;  %v2685_v57 = vpop.permute.xlu0 %784 }
 0xbd7   :  { %2107 = vmatprep.subr.mxu0 %v1577_v22  ;;  %v787_v59 = vmul.f32 %v2685_v57, %v2554_v43  ;;  %v788_v60 = vmul.f32 %v2685_v57, %v2581_v61  ;;  %v790_v1 = vmul.f32 %v2685_v57, %v2620_v28  ;;  %v789_v2 = vmul.f32 %v2685_v57, %v2600_v12 }
 0xbd8   :  { %2108 = vmatpush3.msra.mxu0 %v1577_v22  ;;  %v791_v41 = vmul.f32 %v2685_v57, %v2646_v47 }
 0xbd9   :  { %2109 = vmatprep.subr.mxu0 %v1576_v58  ;;  %799 = vrot.lane.b32.xlu1 %v787_v59, %s2413_s21 }
 0xbda   :  { %2110 = vmatpush3.msra.mxu0 %v1576_v58  ;;  %v2693_v46 = vpop.permute.xlu0 %888 }
 0xbdb   :  { %2112 = vmatmul.mubr.msk.f32.vlgmr.msra.gmra.mxu0 %vm220_vm6, %v2585_v62  ;;  %v892_v63 = vmul.f32 %v2693_v46, %v2581_v61  ;;  %v891_v62 = vmul.f32 %v2693_v46, %v2554_v43  ;;  %v893_v10 = vmul.f32 %v2693_v46, %v2600_v12  ;;  %v894_v14 = vmul.f32 %v2693_v46, %v2620_v28 }
 0xbdc   :  { %2114 = vmatprep.mubr.msk.f32.mxu0 %vm220_vm6, %v2604_v13  ;;  %v895_v42 = vmul.f32 %v2693_v46, %v2646_v47 }
 0xbdd   :  { %801 = vrot.lane.b32.xlu1 %v788_v60, %s2413_s21  ;;  %905 = vrot.lane.b32.xlu0 %v892_v63, %s2413_s21 }
 0xbde   :  { %v2726_v6 = vpop.permute.xlu0 %992 }
 0xbdf   :  { %2115 = vmatmul.mubr.msk.f32.gmra.mxu0 %vm220_vm6, %v2624_v29  ;;  %v995_v9 = vmul.f32 %v2726_v6, %v2554_v43  ;;  %v996_v11 = vmul.f32 %v2726_v6, %v2581_v61  ;;  %v997_v24 = vmul.f32 %v2726_v6, %v2600_v12  ;;  %v998_v20 = vmul.f32 %v2726_v6, %v2620_v28 }
 0xbe0   :  { %2117 = vmatprep.mubr.msk.f32.mxu0 %vm220_vm6, %v691_v55  ;;  %v999_v48 = vmul.f32 %v2726_v6, %v2646_v47 }
 0xbe1   :  { %855 = vrot.lane.b32.xlu0 %v841_v0, %s2413_s21  ;;  %903 = vrot.lane.b32.xlu1 %v891_v62, %s2413_s21 }
 0xbe2   :  { %v2740_v13 = vpop.permute.xlu0 %1044 }
 0xbe3   :  { %v1047_v15 = vmul.f32 %v2740_v13, %v2554_v43  ;;  %v1048_v16 = vmul.f32 %v2740_v13, %v2581_v61  ;;  %v1049_v7 = vmul.f32 %v2740_v13, %v2600_v12  ;;  %v1050_v32 = vmul.f32 %v2740_v13, %v2620_v28 }
 0xbe4   :  { %v1051_v49 = vmul.f32 %v2740_v13, %v2646_v47 }
 0xbe5   :  { %805 = vrot.lane.b32.xlu0 %v790_v1, %s2413_s21  ;;  %803 = vrot.lane.b32.xlu1 %v789_v2, %s2413_s21 }
 0xbe6   :  { %v2774_v21 = vpop.permute.xlu0 %1147 }
 0xbe7   :  { %v1151_v29 = vmul.f32 %v2774_v21, %v2581_v61  ;;  %v1150_v30 = vmul.f32 %v2774_v21, %v2554_v43  ;;  %v1102_v61 = vmul.f32 %v2760_v19, %v2620_v28  ;;  %v1152_v43 = vmul.f32 %v2774_v21, %v2600_v12 }
 0xbe8   :  { %v1153_v33 = vmul.f32 %v2774_v21, %v2620_v28  ;;  %v1154_v51 = vmul.f32 %v2774_v21, %v2646_v47 }
 0xbe9   :  { %957 = vrot.lane.b32.xlu0 %v944_v4, %s2413_s21  ;;  %955 = vrot.lane.b32.xlu1 %v943_v5, %s2413_s21 }
 0xbea   :  { %v852_v34 = vpop.permute.xlu0 %851 }
 0xbeb   :  { %v869_v35 = vsel %vm220_vm6, %v852_v34, 0.0 }
 0xbed   :  { %857 = vrot.lane.b32.xlu1 %v842_v8, %s2413_s21  ;;  %1007 = vrot.lane.b32.xlu0 %v995_v9, %s2413_s21 }
 0xbee   :  { %v854_v38 = vpop.permute.xlu0 %853 }
 0xbef   :  { %v872_v12 = vsel %vm220_vm6, %v854_v38, 0.0 }
 0xbf1   :  { %907 = vrot.lane.b32.xlu1 %v893_v10, %s2413_s21  ;;  %1009 = vrot.lane.b32.xlu0 %v996_v11, %s2413_s21 }
 0xbf5   :  { %909 = vrot.lane.b32.xlu1 %v894_v14, %s2413_s21  ;;  %1059 = vrot.lane.b32.xlu0 %v1047_v15, %s2413_s21 }
 0xbf9   :  { %959 = vrot.lane.b32.xlu1 %v945_v17, %s2413_s21  ;;  %1061 = vrot.lane.b32.xlu0 %v1048_v16, %s2413_s21 }
 0xbfd   :  { %961 = vrot.lane.b32.xlu1 %v946_v18, %s2413_s21  ;;  %1011 = vrot.lane.b32.xlu0 %v997_v24, %s2413_s21 }
 0xc01   :  { %1111 = vrot.lane.b32.xlu1 %v1099_v26, %s2413_s21  ;;  %1113 = vrot.lane.b32.xlu0 %v1100_v27, %s2413_s21 }
 0xc05   :  { %1013 = vrot.lane.b32.xlu1 %v998_v20, %s2413_s21  ;;  %1063 = vrot.lane.b32.xlu0 %v1049_v7, %s2413_s21 }
 0xc09   :  { %1164 = vrot.lane.b32.xlu0 %v1151_v29, %s2413_s21  ;;  %1162 = vrot.lane.b32.xlu1 %v1150_v30, %s2413_s21 }
 0xc0d   :  { %1115 = vrot.lane.b32.xlu0 %v1101_v31, %s2413_s21  ;;  %1065 = vrot.lane.b32.xlu1 %v1050_v32, %s2413_s21 }
 0xc11   :  { %1117 = vrot.lane.b32.xlu0 %v1102_v61, %s2413_s21 }
 0xc15   :  { %1166 = vrot.lane.b32.xlu0 %v1152_v43, %s2413_s21 }
 0xc19   :  { %1168 = vrot.lane.b32.xlu0 %v1153_v33, %s2413_s21 }
 0xc38   :  { %870 = vadd.xlane.f32.xlu0 %v869_v35 }
 0xc4b   :  { %v800_v36 = vpop.permute.xlu1 %799 }
 0xc4c   :  { %v817_v37 = vsel %vm220_vm6, %v800_v36, 0.0 }
 0xc4d   :  { %818 = vadd.xlane.f32.xlu1 %v817_v37 }
 0xc4f   :  { %v802_v39 = vpop.permute.xlu1 %801  ;;  %v906_v5 = vpop.permute.xlu0 %905 }
 0xc50   :  { %v820_v40 = vsel %vm220_vm6, %v802_v39, 0.0  ;;  %v924_v14 = vsel %vm220_vm6, %v906_v5, 0.0 }
 0xc51   :  { %821 = vadd.xlane.f32.xlu0 %v820_v40  ;;  %873 = vadd.xlane.f32.xlu1 %v872_v12 }
 0xc53   :  { %v904_v25 = vpop.permute.xlu1 %903  ;;  %v856_v9 = vpop.permute.xlu0 %855 }
 0xc54   :  { %v921_v28 = vsel %vm220_vm6, %v904_v25, 0.0  ;;  %v875_v15 = vsel %vm220_vm6, %v856_v9, 0.0 }
 0xc55   :  { %922 = vadd.xlane.f32.xlu0 %v921_v28 }
 0xc57   :  { %v804_v53 = vpop.permute.xlu1 %803  ;;  %v806_v11 = vpop.permute.xlu0 %805 }
 0xc58   :  { %v823_v55 = vsel %vm220_vm6, %v804_v53, 0.0  ;;  %v826_v18 = vsel %vm220_vm6, %v806_v11, 0.0 }
 0xc5b   :  { %v956_v54 = vpop.permute.xlu1 %955  ;;  %v958_v17 = vpop.permute.xlu0 %957 }
 0xc5c   :  { %v973_v22 = vsel %vm220_vm6, %v956_v54, 0.0  ;;  %v976_v27 = vsel %vm220_vm6, %v958_v17, 0.0 }
 0xc5f   :  { %v858_v56 = vpop.permute.xlu1 %857  ;;  %v1008_v24 = vpop.permute.xlu0 %1007 }
 0xc60   :  { %v878_v59 = vsel %vm220_vm6, %v858_v56, 0.0  ;;  %v1025_v7 = vsel %vm220_vm6, %v1008_v24, 0.0 }
 0xc62   :  { %807 = vrot.lane.b32.xlu1 %v791_v41, %s2413_s21 }
 0xc63   :  { %v908_v58 = vpop.permute.xlu1 %907  ;;  %v1010_v29 = vpop.permute.xlu0 %1009 }
 0xc64   :  { %v927_v47 = vsel %vm220_vm6, %v908_v58, 0.0  ;;  %v1028_v31 = vsel %vm220_vm6, %v1010_v29, 0.0 }
 0xc66   :  { %911 = vrot.lane.b32.xlu1 %v895_v42, %s2413_s21 }
 0xc67   :  { %v910_v62 = vpop.permute.xlu1 %909  ;;  %v1060_v38 = vpop.permute.xlu0 %1059 }
 0xc68   :  { %v930_v1 = vsel %vm220_vm6, %v910_v62, 0.0  ;;  %v1077_v62 = vsel %vm220_vm6, %v1060_v38, 0.0 }
 0xc6a   :  { %963 = vrot.lane.b32.xlu1 %v947_v44, %s2413_s21 }
 0xc6b   :  { %859 = vrot.lane.b32.xlu0 %v843_v45, %s2413_s21  ;;  %v960_v4 = vpop.permute.xlu1 %959  ;;  %v1062_v12 = vpop.permute.xlu0 %1061 }
 0xc6c   :  { %v979_v43 = vsel %vm220_vm6, %v960_v4, 0.0 }
 0xc6e   :  { %1015 = vrot.lane.b32.xlu1 %v999_v48, %s2413_s21 }
 0xc6f   :  { %v962_v8 = vpop.permute.xlu1 %961  ;;  %v1012_v41 = vpop.permute.xlu0 %1011 }
 0xc70   :  { %v982_v33 = vsel %vm220_vm6, %v962_v8, 0.0 }
 0xc72   :  { %1067 = vrot.lane.b32.xlu1 %v1051_v49, %s2413_s21 }
 0xc73   :  { %v2835_v10 = vpop.permute.xlu1 %1111  ;;  %v1114_v44 = vpop.permute.xlu0 %1113 }
 0xc76   :  { %1119 = vrot.lane.b32.xlu1 %v1103_v50, %s2413_s21 }
 0xc77   :  { %v1064_v48 = vpop.permute.xlu0 %1063 }
 0xc7a   :  { %1170 = vrot.lane.b32.xlu1 %v1154_v51, %s2413_s21 }
 0xc7b   :  { %v1165_v53 = vpop.permute.xlu0 %1164 }
 0xc7c   :  { %v1183_v29 = vsel %vm220_vm6, %v1165_v53, 0.0 }
 0xc7f   :  { %v1116_v54 = vpop.permute.xlu0 %1115 }
 0xc83   :  { %v1118_v56 = vpop.permute.xlu0 %1117 }
 0xc8a   :  { %824 = vadd.xlane.f32.xlu0 %v823_v55 }
 0xc8e   :  { %974 = vadd.xlane.f32.xlu0 %v973_v22  ;;  %v1167_v22 = vpop.permute.xlu0 %1166 }
 0xc92   :  { %879 = vadd.xlane.f32.xlu0 %v878_v59  ;;  %v1169_v58 = vpop.permute.xlu0 %1168 }
 0xc93   :  { %v760_v60 = vpop.f32.mrf.mxu0 }
 0xc94   :  { %v764_v63 = vadd.f32 %v2542_v23, %v760_v60  ;;  %v2837_v23 = vpop.permute.xlu1 %1013 }
 0xc95   :  { %v2085_v0 = vpop.f32.mrf.mxu0 }
 0xc96   :  { %2186 = vtanh.f32 %v764_v63  ;;  %928 = vadd.xlane.f32.xlu0 %v927_v47  ;;  %v1935_v36 = vmul.f32 -1.442695, %v764_v63 }
 0xc98   :  { %v2841_v16 = vpop.permute.xlu1 %1162  ;;  %2188 = vpow2.f32 %v1935_v36 }
 0xc9a   :  { %931 = vadd.xlane.f32.xlu0 %v930_v1  ;;  %v1080_v1 = vsel %vm220_vm6, %v1062_v12, 0.0 }
 0xc9c   :  { %v2844_v26 = vpop.permute.xlu1 %1065 }
 0xca3   :  { %v2187_v2 = vpop.eup %2186 }
 0xca4   :  { %773 = vrot.lane.b32.xlu1 %v2187_v2, %s2410_s3 }
 0xca5   :  { %v2189_v40 = vpop.eup %2188 }
 0xca6   :  { %v768_v25 = vadd.f32 1.0, %v2189_v40 }
 0xca8   :  { %2190 = vrcp.f32 %v768_v25  ;;  %v1180_v25 = vsel %vm220_vm6, %v2841_v16, 0.0 }
 0xcb5   :  { %v2191_v49 = vpop.eup %2190 }
 0xcc1   :  { %v2868_v59 = vpop.xlane.xlu0 %870 }
 0xcc8   :  { %925 = vadd.xlane.f32.xlu1 %v924_v14 }
 0xccc   :  { %876 = vadd.xlane.f32.xlu1 %v875_v15 }
 0xcd0   :  { %827 = vadd.xlane.f32.xlu1 %v826_v18 }
 0xcd4   :  { %977 = vadd.xlane.f32.xlu1 %v976_v27 }
 0xcd6   :  { %v2847_v20 = vpop.xlane.xlu1 %818 }
 0xcd8   :  { %1026 = vadd.xlane.f32.xlu1 %v1025_v7  ;;  %v1031_v7 = vsel %vm220_vm6, %v1012_v41, 0.0 }
 0xcda   :  { %v2850_v30 = vpop.xlane.xlu1 %873  ;;  %v2870_v60 = vpop.xlane.xlu0 %821 }
 0xcdc   :  { %1029 = vadd.xlane.f32.xlu1 %v1028_v31  ;;  %v1135_v31 = vsel %vm220_vm6, %v1116_v54, 0.0 }
 0xcde   :  { %v808_v32 = vpop.permute.xlu1 %807  ;;  %v2872_v63 = vpop.xlane.xlu0 %922 }
 0xcdf   :  { %v829_v61 = vsel %vm220_vm6, %v808_v32, 0.0 }
 0xce0   :  { %830 = vadd.xlane.f32.xlu0 %v829_v61  ;;  %v1186_v61 = vsel %vm220_vm6, %v1167_v22, 0.0 }
 0xce2   :  { %v912_v34 = vpop.permute.xlu1 %911  ;;  %v860_v0 = vpop.permute.xlu0 %859 }
 0xce3   :  { %v933_v35 = vsel %vm220_vm6, %v912_v34, 0.0  ;;  %v881_v47 = vsel %vm220_vm6, %v860_v0, 0.0  ;;  %v1189_v34 = vsel %vm220_vm6, %v1169_v58, 0.0 }
 0xce4   :  { %980 = vadd.xlane.f32.xlu0 %v979_v43 }
 0xce6   :  { %v2857_v37 = vpop.permute.xlu1 %963 }
 0xce8   :  { %983 = vadd.xlane.f32.xlu0 %v982_v33 }
 0xcea   :  { %v2859_v39 = vpop.permute.xlu1 %1015 }
 0xcec   :  { %934 = vadd.xlane.f32.xlu0 %v933_v35 }
 0xcee   :  { %v2861_v28 = vpop.permute.xlu1 %1067 }
 0xcef   :  { %v1089_v16 = vsel %vm220_vm6, %v2861_v28, 0.0 }
 0xcf2   :  { %v2863_v42 = vpop.permute.xlu1 %1119 }
 0xcf6   :  { %v2865_v45 = vpop.permute.xlu1 %1170 }
 0xd13   :  { %v2921_v32 = vpop.xlane.xlu0 %824 }
 0xd16   :  { %v774_v50 = vpop.permute.xlu1 %773 }
 0xd17   :  { %v776_v51 = vmul.f32 %v2191_v49, %v774_v50  ;;  %v2928_v33 = vpop.xlane.xlu0 %974 }
 0xd19   :  { %2192 = vtanh.f32 %v776_v51 }
 0xd1b   :  { %v2931_v35 = vpop.xlane.xlu0 %879 }
 0xd26   :  { %v2193_v55 = vpop.eup %2192 }
 0xd27   :  { %779 = vrot.lane.b32.xlu1 %v2193_v55, %s2413_s21 }
 0xd4b   :  { %882 = vadd.xlane.f32.xlu1 %v881_v47 }
 0xd4f   :  { %1078 = vadd.xlane.f32.xlu1 %v1077_v62 }
 0xd51   :  { %v2877_v2 = vpop.xlane.xlu1 %925 }
 0xd53   :  { %1081 = vadd.xlane.f32.xlu1 %v1080_v1 }
 0xd55   :  { %v2879_v4 = vpop.xlane.xlu1 %876 }
 0xd59   :  { %v2881_v5 = vpop.xlane.xlu1 %827 }
 0xd5d   :  { %v2883_v8 = vpop.xlane.xlu1 %977 }
 0xd61   :  { %v2885_v9 = vpop.xlane.xlu1 %1026 }
 0xd65   :  { %v2887_v11 = vpop.xlane.xlu1 %1029 }
 0xd99   :  { %v780_v14 = vpop.permute.xlu1 %779 }
 0xd9a   :  { %v2889_v15 = vmul.f32 %v2191_v49, %v780_v14 }
 0xd9c   :  { %v844_v17 = vmul.f32 %v2666_v52, %v2889_v15  ;;  %v792_v18 = vmul.f32 %v2685_v57, %v2889_v15  ;;  %v896_v24 = vmul.f32 %v2693_v46, %v2889_v15  ;;  %v1000_v27 = vmul.f32 %v2726_v6, %v2889_v15 }
 0xd9d   :  { %v948_v52 = vmul.f32 %v2718_v3, %v2889_v15  ;;  %v1052_v57 = vmul.f32 %v2740_v13, %v2889_v15  ;;  %v1129_v46 = vsel %vm220_vm6, %v2835_v10, 0.0  ;;  %v1034_v6 = vsel %vm220_vm6, %v2837_v23, 0.0 }
 0xd9e   :  { %861 = vrot.lane.b32.xlu0 %v844_v17, %s2413_s21  ;;  %809 = vrot.lane.b32.xlu1 %v792_v18, %s2413_s21  ;;  %v1132_v3 = vsel %vm220_vm6, %v1114_v44, 0.0  ;;  %v1083_v13 = vsel %vm220_vm6, %v1064_v48, 0.0  ;;  %v1138_v10 = vsel %vm220_vm6, %v1118_v56, 0.0  ;;  %v1104_v23 = vmul.f32 %v2760_v19, %v2889_v15  ;;  %v2933_v19 = vpop.xlane.xlu0 %928  ;;  %v1583_v17 = vld [vmem:[%s3418_s5 + $0x18] sm:$0xff] }
 0xd9f   :  { %v1155_v43 = vmul.f32 %v2774_v21, %v2889_v15  ;;  %v985_v21 = vsel %vm220_vm6, %v2857_v37, 0.0  ;;  %v1086_v48 = vsel %vm220_vm6, %v2844_v26, 0.0  ;;  %v1037_v37 = vsel %vm220_vm6, %v2859_v39, 0.0  ;;  %2086 = vmatprep.subr.mxu1 %v1583_v17 }
 0xda0   :  { %v1141_v26 = vsel %vm220_vm6, %v2863_v42, 0.0  ;;  %v1192_v42 = vsel %vm220_vm6, %v2865_v45, 0.0  ;;  %v1199_v45 = vmax.f32 %v2870_v60, %v2850_v30  ;;  %2087 = vmatpush3.msra.mxu1 %v1583_v17 }
 0xda2   :  { %913 = vrot.lane.b32.xlu0 %v896_v24, %s2413_s21  ;;  %1017 = vrot.lane.b32.xlu1 %v1000_v27, %s2413_s21  ;;  %v2935_v36 = vpop.xlane.xlu0 %931  ;;  %v1582_v24 = vld [vmem:[%s3418_s5 + $0x10] sm:$0xff]  ;;  %v1205_v27 = vmax.f32 %v1199_v45, %v2877_v2 }
 0xda3   :  { %2088 = vmatprep.subr.mxu1 %v1582_v24 }
 0xda4   :  { %2089 = vmatpush3.msra.mxu1 %v1582_v24 }
 0xda6   :  { %965 = vrot.lane.b32.xlu0 %v948_v52, %s2413_s21  ;;  %1069 = vrot.lane.b32.xlu1 %v1052_v57, %s2413_s21  ;;  %v2937_v38 = vpop.xlane.xlu0 %830  ;;  %v1580_v57 = vld [vmem:[%s3418_s5] sm:$0xff] }
 0xdaa   :  { %v2939_v40 = vpop.xlane.xlu0 %980 }
 0xdae   :  { %v2947_v41 = vpop.xlane.xlu0 %983 }
 0xdb2   :  { %v2953_v49 = vpop.xlane.xlu0 %934 }
 0xdc5   :  { %1130 = vadd.xlane.f32.xlu0 %v1129_v46 }
 0xdc9   :  { %1035 = vadd.xlane.f32.xlu0 %v1034_v6 }
 0xdca   :  { %1032 = vadd.xlane.f32.xlu1 %v1031_v7  ;;  %v1211_v7 = vmax.f32 %v1205_v27, %v2883_v8 }
 0xdce   :  { %1133 = vadd.xlane.f32.xlu1 %v1132_v3  ;;  %v1217_v3 = vmax.f32 %v1211_v7, %v2887_v11 }
 0xdd2   :  { %1084 = vadd.xlane.f32.xlu1 %v1083_v13 }
 0xdd4   :  { %v2943_v12 = vpop.xlane.xlu1 %882 }
 0xdd6   :  { %1184 = vadd.xlane.f32.xlu1 %v1183_v29 }
 0xdd8   :  { %v2949_v44 = vpop.xlane.xlu1 %1078 }
 0xdda   :  { %1136 = vadd.xlane.f32.xlu1 %v1135_v31 }
 0xddc   :  { %v2957_v50 = vpop.xlane.xlu1 %1081 }
 0xdde   :  { %1139 = vadd.xlane.f32.xlu1 %v1138_v10  ;;  %v1223_v10 = vmax.f32 %v1217_v3, %v2957_v50 }
 0xddf   :  { %1121 = vrot.lane.b32.xlu0 %v1104_v23, %s2413_s21  ;;  %v1200_v23 = vmax.f32 %v2921_v32, %v2879_v4 }
 0xde2   :  { %1187 = vadd.xlane.f32.xlu1 %v1186_v61 }
 0xde3   :  { %1172 = vrot.lane.b32.xlu0 %v1155_v43, %s2413_s21 }
 0xde6   :  { %1190 = vadd.xlane.f32.xlu1 %v1189_v34 }
 0xe02   :  { %986 = vadd.xlane.f32.xlu0 %v985_v21  ;;  %v1206_v21 = vmax.f32 %v1200_v23, %v2933_v19 }
 0xe06   :  { %1181 = vadd.xlane.f32.xlu0 %v1180_v25 }
 0xe0a   :  { %1087 = vadd.xlane.f32.xlu0 %v1086_v48 }
 0xe0e   :  { %1038 = vadd.xlane.f32.xlu0 %v1037_v37 }
 0xe10   :  { %v862_v51 = vpop.permute.xlu0 %861  ;;  %v810_v54 = vpop.permute.xlu1 %809 }
 0xe11   :  { %v884_v53 = vsel %vm220_vm6, %v862_v51, 0.0  ;;  %v832_v58 = vsel %vm220_vm6, %v810_v54, 0.0  ;;  %v1212_v51 = vmax.f32 %v1206_v21, %v2939_v40 }
 0xe12   :  { %1090 = vadd.xlane.f32.xlu0 %v1089_v16  ;;  %885 = vadd.xlane.f32.xlu1 %v884_v53 }
 0xe14   :  { %v914_v55 = vpop.permute.xlu0 %913  ;;  %v1018_v39 = vpop.permute.xlu1 %1017 }
 0xe15   :  { %v936_v56 = vsel %vm220_vm6, %v914_v55, 0.0  ;;  %v1040_v28 = vsel %vm220_vm6, %v1018_v39, 0.0 }
 0xe16   :  { %1142 = vadd.xlane.f32.xlu0 %v1141_v26  ;;  %937 = vadd.xlane.f32.xlu1 %v936_v56 }
 0xe18   :  { %v966_v22 = vpop.permute.xlu0 %965  ;;  %v1070_v47 = vpop.permute.xlu1 %1069 }
 0xe19   :  { %v988_v0 = vsel %vm220_vm6, %v966_v22, 0.0  ;;  %v1092_v62 = vsel %vm220_vm6, %v1070_v47, 0.0 }
 0xe1a   :  { %833 = vadd.xlane.f32.xlu0 %v832_v58  ;;  %989 = vadd.xlane.f32.xlu1 %v988_v0 }
 0xe1e   :  { %1041 = vadd.xlane.f32.xlu0 %v1040_v28 }
 0xe22   :  { %1093 = vadd.xlane.f32.xlu0 %v1092_v62 }
 0xe26   :  { %1193 = vadd.xlane.f32.xlu0 %v1192_v42 }
 0xe3c   :  { %1698 = vrot.lane.b32.xlu0 %v2889_v15, %s2413_s21  ;;  %v1581_v15 = vld [vmem:[%s3418_s5 + $0x8] sm:$0xff] }
 0xe3d   :  { %2090 = vmatprep.subr.mxu1 %v1581_v15 }
 0xe3e   :  { %2091 = vmatpush3.msra.mxu1 %v1581_v15 }
 0xe3f   :  { %2092 = vmatprep.subr.mxu1 %v1580_v57 }
 0xe40   :  { %2093 = vmatpush3.msra.mxu1 %v1580_v57 }
 0xe4e   :  { %v2973_v1 = vpop.xlane.xlu0 %1130 }
 0xe52   :  { %v2975_v14 = vpop.xlane.xlu0 %1035 }
 0xe53   :  { %v2980_v18 = vpop.xlane.xlu1 %1032 }
 0xe54   :  { %v1218_v54 = vmax.f32 %v1212_v51, %v2980_v18 }
 0xe56   :  { %v1122_v52 = vpop.permute.xlu0 %1121 }
 0xe57   :  { %v1144_v46 = vsel %vm220_vm6, %v1122_v52, 0.0  ;;  %v2995_v6 = vpop.xlane.xlu1 %1133 }
 0xe58   :  { %1145 = vadd.xlane.f32.xlu1 %v1144_v46  ;;  %v1229_v61 = vmax.f32 %v1223_v10, %v2995_v6 }
 0xe5a   :  { %v1173_v13 = vpop.permute.xlu0 %1172 }
 0xe5b   :  { %v1195_v29 = vsel %vm220_vm6, %v1173_v13, 0.0  ;;  %v1085_v31 = vpop.xlane.xlu1 %1084 }
 0xe5c   :  { %1196 = vadd.xlane.f32.xlu1 %v1195_v29  ;;  %v1224_v56 = vmax.f32 %v1218_v54, %v1085_v31 }
 0xe5f   :  { %v1185_v43 = vpop.xlane.xlu1 %1184 }
 0xe60   :  { %v1235_v34 = vmax.f32 %v1229_v61, %v1185_v43 }
 0xe62   :  { %v1241_v25 = vsub.f32 %v2870_v60, %v1235_v34  ;;  %v1259_v48 = vsub.f32 %v2850_v30, %v1235_v34  ;;  %v1277_v55 = vsub.f32 %v2877_v2, %v1235_v34  ;;  %v1295_v39 = vsub.f32 %v2883_v8, %v1235_v34 }
 0xe63   :  { %v1137_v37 = vpop.xlane.xlu1 %1136  ;;  %v1313_v28 = vsub.f32 %v2887_v11, %v1235_v34  ;;  %v1331_v27 = vsub.f32 %v2957_v50, %v1235_v34  ;;  %v1349_v57 = vsub.f32 %v2995_v6, %v1235_v34  ;;  %v1367_v3 = vsub.f32 %v1185_v43, %v1235_v34 }
 0xe64   :  { %v1248_v16 = vmul.f32 1.442695, %v1241_v25  ;;  %v1266_v53 = vmul.f32 1.442695, %v1259_v48  ;;  %v1230_v22 = vmax.f32 %v1224_v56, %v1137_v37  ;;  %v1284_v60 = vmul.f32 1.442695, %v1277_v55 }
 0xe65   :  { %v1302_v0 = vmul.f32 1.442695, %v1295_v39  ;;  %v1320_v15 = vmul.f32 1.442695, %v1313_v28  ;;  %v1356_v7 = vmul.f32 1.442695, %v1349_v57  ;;  %v1201_v28 = vmax.f32 %v2881_v5, %v2931_v35 }
 0xe66   :  { %2194 = vpow2.f32 %v1248_v16  ;;  %v1374_v61 = vmul.f32 1.442695, %v1367_v3 }
 0xe67   :  { %v3010_v26 = vpop.xlane.xlu1 %1139  ;;  %2196 = vpow2.f32 %v1266_v53  ;;  %v1198_v53 = vmax.f32 %v2847_v20, %v2868_v59 }
 0xe68   :  { %2198 = vpow2.f32 %v1284_v60 }
 0xe69   :  { %2200 = vpow2.f32 %v1302_v0  ;;  %v1204_v39 = vmax.f32 %v1198_v53, %v2872_v63 }
 0xe6b   :  { %v1188_v58 = vpop.xlane.xlu1 %1187 }
 0xe6c   :  { %v1236_v30 = vmax.f32 %v1230_v22, %v1188_v58 }
 0xe6e   :  { %v1242_v47 = vsub.f32 %v2921_v32, %v1236_v30  ;;  %v1260_v62 = vsub.f32 %v2879_v4, %v1236_v30  ;;  %v1278_v2 = vsub.f32 %v2933_v19, %v1236_v30  ;;  %v1296_v42 = vsub.f32 %v2939_v40, %v1236_v30 }
 0xe6f   :  { %v1314_v45 = vsub.f32 %v2980_v18, %v1236_v30  ;;  %v1332_v19 = vsub.f32 %v1085_v31, %v1236_v30  ;;  %v1338_v40 = vmul.f32 1.442695, %v1331_v27  ;;  %v1350_v50 = vsub.f32 %v1137_v37, %v1236_v30 }
 0xe70   :  { %v1250_v17 = vmul.f32 1.442695, %v1242_v47  ;;  %v1268_v24 = vmul.f32 1.442695, %v1260_v62  ;;  %v1286_v8 = vmul.f32 1.442695, %v1278_v2  ;;  %v1368_v10 = vsub.f32 %v1188_v58, %v1236_v30 }
 0xe71   :  { %v1304_v11 = vmul.f32 1.442695, %v1296_v42  ;;  %v1322_v4 = vmul.f32 1.442695, %v1314_v45  ;;  %v1340_v46 = vmul.f32 1.442695, %v1332_v19  ;;  %v1210_v58 = vmax.f32 %v1204_v39, %v2928_v33 }
 0xe72   :  { %2202 = vpow2.f32 %v1250_v17  ;;  %v1358_v31 = vmul.f32 1.442695, %v1350_v50  ;;  %v1376_v48 = vmul.f32 1.442695, %v1368_v10  ;;  %v1207_v45 = vmax.f32 %v1201_v28, %v2935_v36 }
 0xe73   :  { %2204 = vpow2.f32 %v1268_v24  ;;  %v3020_v32 = vpop.eup %2194  ;;  %v1216_v47 = vmax.f32 %v1210_v58, %v2885_v9 }
 0xe74   :  { %2206 = vpow2.f32 %v1286_v8  ;;  %v3022_v52 = vpop.eup %2196  ;;  %v1213_v19 = vmax.f32 %v1207_v45, %v2947_v41 }
 0xe75   :  { %2208 = vpow2.f32 %v1320_v15  ;;  %v1385_v18 = vadd.f32 %v3022_v52, %v3020_v32  ;;  %v3027_v13 = vpop.eup %2198  ;;  %v1222_v17 = vmax.f32 %v1216_v47, %v2949_v44 }
 0xe76   :  { %2210 = vpow2.f32 %v1304_v11  ;;  %v3030_v23 = vpop.eup %2200 }
 0xe77   :  { %2212 = vpow2.f32 %v1322_v4  ;;  %v1391_v29 = vadd.f32 %v3027_v13, %v1385_v18  ;;  %v1228_v15 = vmax.f32 %v1222_v17, %v2973_v1 }
 0xe78   :  { %2214 = vpow2.f32 %v1338_v40 }
 0xe79   :  { %2216 = vpow2.f32 %v1340_v46  ;;  %v1397_v25 = vadd.f32 %v3030_v23, %v1391_v29  ;;  %v1219_v46 = vmax.f32 %v1213_v19, %v2975_v14  ;;  %v1202_v19 = vmax.f32 %v2937_v38, %v2943_v12 }
 0xe7a   :  { %2218 = vpow2.f32 %v1356_v7 }
 0xe7b   :  { %2220 = vpow2.f32 %v1358_v31 }
 0xe7c   :  { %2222 = vpow2.f32 %v1374_v61 }
 0xe7d   :  { %2224 = vpow2.f32 %v1376_v48 }
 0xe7f   :  { %v3032_v6 = vpop.eup %2202 }
 0xe80   :  { %v3034_v21 = vpop.eup %2204 }
 0xe81   :  { %v1386_v43 = vadd.f32 %v3034_v21, %v3032_v6  ;;  %v3039_v34 = vpop.eup %2206 }
 0xe82   :  { %v3041_v37 = vpop.eup %2208 }
 0xe83   :  { %v1392_v51 = vadd.f32 %v3039_v34, %v1386_v43  ;;  %v3044_v16 = vpop.eup %2210  ;;  %v1403_v54 = vadd.f32 %v3041_v37, %v1397_v25 }
 0xe84   :  { %v3050_v56 = vpop.eup %2212 }
 0xe85   :  { %v1398_v55 = vadd.f32 %v3044_v16, %v1392_v51  ;;  %v3054_v60 = vpop.eup %2214 }
 0xe86   :  { %v1409_v30 = vadd.f32 %v3054_v60, %v1403_v54  ;;  %v3058_v0 = vpop.eup %2216 }
 0xe87   :  { %v1404_v22 = vadd.f32 %v3050_v56, %v1398_v55  ;;  %v3066_v42 = vpop.eup %2218 }
 0xe88   :  { %v1415_v24 = vadd.f32 %v3066_v42, %v1409_v30  ;;  %v3070_v8 = vpop.eup %2220 }
 0xe89   :  { %v1410_v62 = vadd.f32 %v3058_v0, %v1404_v22  ;;  %v3075_v4 = vpop.eup %2222 }
 0xe8a   :  { %v1421_v57 = vadd.f32 %v3075_v4, %v1415_v24  ;;  %v3079_v18 = vpop.eup %2224 }
 0xe8b   :  { %v3064_v2 = vpop.xlane.xlu0 %986  ;;  %v1416_v27 = vadd.f32 %v3070_v8, %v1410_v62 }
 0xe8c   :  { %2226 = vrcp.f32 %v1421_v57 }
 0xe8d   :  { %v1422_v29 = vadd.f32 %v3079_v18, %v1416_v27 }
 0xe8f   :  { %v1182_v11 = vpop.xlane.xlu0 %1181 }
 0xe90   :  { %v1234_v40 = vmax.f32 %v1228_v15, %v1182_v11 }
 0xe92   :  { %v1240_v50 = vsub.f32 %v2847_v20, %v1234_v40  ;;  %v1258_v7 = vsub.f32 %v2868_v59, %v1234_v40  ;;  %v1276_v3 = vsub.f32 %v2872_v63, %v1234_v40  ;;  %v1294_v31 = vsub.f32 %v2928_v33, %v1234_v40  ;;  %v1191_v59 = vpop.xlane.xlu1 %1190 }
 0xe93   :  { %v1088_v10 = vpop.xlane.xlu0 %1087  ;;  %v1312_v48 = vsub.f32 %v2885_v9, %v1234_v40  ;;  %v1330_v53 = vsub.f32 %v2949_v44, %v1234_v40  ;;  %v1348_v55 = vsub.f32 %v2973_v1, %v1234_v40  ;;  %v1366_v22 = vsub.f32 %v1182_v11, %v1234_v40 }
 0xe94   :  { %v1246_v61 = vmul.f32 1.442695, %v1240_v50  ;;  %v1264_v25 = vmul.f32 1.442695, %v1258_v7  ;;  %v1225_v43 = vmax.f32 %v1219_v46, %v1088_v10  ;;  %v1282_v51 = vmul.f32 1.442695, %v1276_v3 }
 0xe95   :  { %v1300_v63 = vmul.f32 1.442695, %v1294_v31  ;;  %v1318_v33 = vmul.f32 1.442695, %v1312_v48  ;;  %v1336_v9 = vmul.f32 1.442695, %v1330_v53  ;;  %v1208_v31 = vmax.f32 %v1202_v19, %v2953_v49 }
 0xe96   :  { %2228 = vpow2.f32 %v1246_v61  ;;  %v1231_v20 = vmax.f32 %v1225_v43, %v3010_v26  ;;  %v1354_v62 = vmul.f32 1.442695, %v1348_v55  ;;  %v1372_v15 = vmul.f32 1.442695, %v1366_v22  ;;  %v3170_v19 = vld [vmem:[%s3414_s1] sm:$0xff] }
 0xe97   :  { %2230 = vpow2.f32 %v1264_v25  ;;  %v3090_v54 = vpop.xlane.xlu0 %1038  ;;  %v1214_v43 = vmax.f32 %v1208_v31, %v3064_v2 }
 0xe98   :  { %2232 = vrcp.f32 %v1422_v29  ;;  %v1237_v39 = vmax.f32 %v1231_v20, %v1191_v59 }
 0xe99   :  { %2234 = vpow2.f32 %v1282_v51  ;;  %v3103_v11 = vpop.eup %2226 }
 0xe9a   :  { %v1243_v58 = vsub.f32 %v2881_v5, %v1237_v39  ;;  %v1261_v44 = vsub.f32 %v2931_v35, %v1237_v39  ;;  %v1279_v30 = vsub.f32 %v2935_v36, %v1237_v39  ;;  %2236 = vpow2.f32 %v1300_v63 }
 0xe9b   :  { %v1297_v28 = vsub.f32 %v2947_v41, %v1237_v39  ;;  %v3097_v47 = vpop.xlane.xlu0 %1090  ;;  %2238 = vpow2.f32 %v1318_v33  ;;  %v1315_v45 = vsub.f32 %v2975_v14, %v1237_v39  ;;  %v1333_v35 = vsub.f32 %v1088_v10, %v1237_v39 }
 0xe9c   :  { %v1252_v17 = vmul.f32 1.442695, %v1243_v58  ;;  %v1270_v24 = vmul.f32 1.442695, %v1261_v44  ;;  %2240 = vpow2.f32 %v1336_v9  ;;  %v1288_v1 = vmul.f32 1.442695, %v1279_v30 }
 0xe9d   :  { %v1306_v5 = vmul.f32 1.442695, %v1297_v28  ;;  %v1324_v36 = vmul.f32 1.442695, %v1315_v45  ;;  %v1351_v41 = vsub.f32 %v3010_v26, %v1237_v39  ;;  %v1342_v14 = vmul.f32 1.442695, %v1333_v35 }
 0xe9e   :  { %2242 = vpow2.f32 %v1252_v17  ;;  %v1369_v57 = vsub.f32 %v1191_v59, %v1237_v39  ;;  %v1220_v59 = vmax.f32 %v1214_v43, %v3090_v54  ;;  %v1439_v30 = vmul.f32 %v3103_v11, %v3020_v32 }
 0xe9f   :  { %2244 = vpow2.f32 %v1270_v24  ;;  %v3100_v27 = vpop.xlane.xlu0 %1142  ;;  %v1360_v3 = vmul.f32 1.442695, %v1351_v41  ;;  %v1451_v28 = vmul.f32 %v3103_v11, %v3022_v52 }
 0xea0   :  { %2246 = vpow2.f32 %v1354_v62  ;;  %v1378_v61 = vmul.f32 1.442695, %v1369_v57  ;;  %v1226_v9 = vmax.f32 %v1220_v59, %v3097_v47  ;;  %v3176_v57 = vld [vmem:[%s3414_s1 + $0x8] sm:$0xff] }
 0xea1   :  { %2248 = vpow2.f32 %v1288_v1 }
 0xea2   :  { %2250 = vpow2.f32 %v1372_v15  ;;  %v1232_v17 = vmax.f32 %v1226_v9, %v3100_v27 }
 0xea3   :  { %v3107_v40 = vpop.eup %2228  ;;  %2252 = vpow2.f32 %v1306_v5  ;;  %v3109_v46 = vpop.xlane.xlu0 %833 }
 0xea4   :  { %v3111_v50 = vpop.eup %2230  ;;  %2254 = vpow2.f32 %v1324_v36 }
 0xea5   :  { %v3113_v7 = vpop.eup %2232  ;;  %v1384_v26 = vadd.f32 %v3111_v50, %v3107_v40  ;;  %2256 = vpow2.f32 %v1342_v14  ;;  %v1445_v14 = vmul.f32 %v3170_v19, %v1439_v30 }
 0xea6   :  { %v3117_v29 = vpop.eup %2234  ;;  %2258 = vpow2.f32 %v1360_v3  ;;  %v1440_v32 = vmul.f32 %v3113_v7, %v3032_v6  ;;  %v1452_v52 = vmul.f32 %v3113_v7, %v3034_v21  ;;  %v1457_v6 = vmul.f32 %v3176_v57, %v1451_v28 }
 0xea7   :  { %v1390_v10 = vadd.f32 %v3117_v29, %v1384_v26  ;;  %v3121_v25 = vpop.xlane.xlu0 %1041  ;;  %v3123_v48 = vpop.eup %2236  ;;  %2260 = vpow2.f32 %v1378_v61  ;;  %v1470_v28 = vmul.f32 %v3113_v7, %v3039_v34 }
 0xea8   :  { %v3126_v51 = vpop.eup %2238 }
 0xea9   :  { %v1396_v53 = vadd.f32 %v3123_v48, %v1390_v10  ;;  %v3129_v20 = vpop.eup %2240 }
 0xeab   :  { %v3132_v63 = vpop.eup %2242  ;;  %v1402_v33 = vadd.f32 %v3126_v51, %v1396_v53  ;;  %v3135_v55 = vpop.xlane.xlu0 %1093  ;;  %v1469_v53 = vmul.f32 %v3103_v11, %v3027_v13  ;;  %v1463_v13 = vadd.f32 %v1457_v6, %v1445_v14 }
 0xeac   :  { %v3137_v39 = vpop.eup %2244 }
 0xead   :  { %v3140_v22 = vpop.eup %2246  ;;  %v1408_v58 = vadd.f32 %v3129_v20, %v1402_v33  ;;  %v1387_v44 = vadd.f32 %v3137_v39, %v3132_v63 }
 0xeae   :  { %v3149_v62 = vpop.eup %2248 }
 0xeaf   :  { %v3152_v24 = vpop.eup %2250  ;;  %v1414_v1 = vadd.f32 %v3140_v22, %v1408_v58  ;;  %v1393_v45 = vadd.f32 %v3149_v62, %v1387_v44  ;;  %v3156_v15 = vpop.xlane.xlu0 %1193 }
 0xeb0   :  { %v3158_v5 = vpop.eup %2252  ;;  %v1238_v35 = vmax.f32 %v1232_v17, %v3156_v15 }
 0xeb1   :  { %v1420_v36 = vadd.f32 %v3152_v24, %v1414_v1  ;;  %v1399_v41 = vadd.f32 %v3158_v5, %v1393_v45  ;;  %v3179_v26 = vpop.eup %2254 }
 0xeb2   :  { %v1244_v21 = vsub.f32 %v2937_v38, %v1238_v35  ;;  %v1262_v3 = vsub.f32 %v2943_v12, %v1238_v35  ;;  %v1280_v31 = vsub.f32 %v2953_v49, %v1238_v35  ;;  %v1298_v10 = vsub.f32 %v3064_v2, %v1238_v35  ;;  %v3188_v59 = vpop.eup %2256 }
 0xeb3   :  { %2262 = vrcp.f32 %v1420_v36  ;;  %v1405_v61 = vadd.f32 %v3179_v26, %v1399_v41  ;;  %v1699_v43 = vpop.permute.xlu0 %1698  ;;  %v1446_v38 = vmul.f32 %v3170_v19, %v1440_v32  ;;  %v1458_v12 = vmul.f32 %v3176_v57, %v1452_v52  ;;  %v3195_v44 = vpop.eup %2258  ;;  %v3206_v32 = vld [vmem:[%s3414_s1 + $0x10] sm:$0xff] }
 0xeb4   :  { %v1254_v33 = vmul.f32 1.442695, %v1244_v21  ;;  %v1272_v9 = vmul.f32 1.442695, %v1262_v3  ;;  %2118 = vmatmul.mubr.msk.f32.gmra.mxu0 %vm220_vm6, %v1699_v43  ;;  %v1290_v2 = vmul.f32 1.442695, %v1280_v31  ;;  %v1316_v58 = vsub.f32 %v3090_v54, %v1238_v35  ;;  %v3201_v45 = vpop.eup %2260 }
 0xeb5   :  { %v1411_v49 = vadd.f32 %v3188_v59, %v1405_v61  ;;  %v1308_v30 = vmul.f32 1.442695, %v1298_v10  ;;  %v1334_v1 = vsub.f32 %v3097_v47, %v1238_v35  ;;  %v1475_v54 = vmul.f32 %v3206_v32, %v1469_v53 }
 0xeb6   :  { %2264 = vpow2.f32 %v1254_v33  ;;  %v1487_v52 = vmul.f32 %v3103_v11, %v3030_v23  ;;  %v1464_v36 = vadd.f32 %v1458_v12, %v1446_v38  ;;  %v1326_v41 = vmul.f32 1.442695, %v1316_v58  ;;  %v3220_v23 = vld [vmem:[%s3414_s1 + $0x18] sm:$0xff] }
 0xeb7   :  { %v1417_v17 = vadd.f32 %v3195_v44, %v1411_v49  ;;  %2266 = vpow2.f32 %v1272_v9  ;;  %v1352_v14 = vsub.f32 %v3100_v27, %v1238_v35  ;;  %v1481_v47 = vadd.f32 %v1475_v54, %v1463_v13  ;;  %v3231_v9 = vld [vmem:[%s3414_s1 + $0x20] sm:$0xff] }
 0xeb8   :  { %2268 = vpow2.f32 %v1290_v2  ;;  %v1476_v6 = vmul.f32 %v3206_v32, %v1470_v28  ;;  %v1488_v21 = vmul.f32 %v3113_v7, %v3044_v16  ;;  %v1344_v3 = vmul.f32 1.442695, %v1334_v1 }
 0xeb9   :  { %v1423_v34 = vadd.f32 %v3201_v45, %v1417_v17  ;;  %2270 = vpow2.f32 %v1308_v30  ;;  %v1370_v31 = vsub.f32 %v3156_v15, %v1238_v35  ;;  %v1493_v10 = vmul.f32 %v3220_v23, %v1487_v52 }
 0xeba   :  { %v1505_v27 = vmul.f32 %v3103_v11, %v3041_v37  ;;  %v1482_v61 = vadd.f32 %v1476_v6, %v1464_v36  ;;  %v1362_v43 = vmul.f32 1.442695, %v1352_v14  ;;  %v1494_v16 = vmul.f32 %v3220_v23, %v1488_v21  ;;  %v3258_v36 = vld [vmem:[%s3414_s1 + $0x28] sm:$0xff] }
 0xebb   :  { %2272 = vrcp.f32 %v1423_v34  ;;  %v1499_v53 = vadd.f32 %v1493_v10, %v1481_v47  ;;  %v1506_v33 = vmul.f32 %v3113_v7, %v3050_v56  ;;  %v1380_v15 = vmul.f32 1.442695, %v1370_v31 }
 0xebc   :  { %2274 = vpow2.f32 %v1326_v41  ;;  %v1511_v38 = vmul.f32 %v3231_v9, %v1505_v27  ;;  %v1523_v37 = vmul.f32 %v3103_v11, %v3054_v60  ;;  %v1500_v12 = vadd.f32 %v1494_v16, %v1482_v61 }
 0xebd   :  { %2276 = vpow2.f32 %v1344_v3  ;;  %v1541_v30 = vmul.f32 %v3103_v11, %v3066_v42  ;;  %v1512_v13 = vmul.f32 %v3231_v9, %v1506_v33  ;;  %v1524_v28 = vmul.f32 %v3113_v7, %v3058_v0 }
 0xebe   :  { %2278 = vpow2.f32 %v1362_v43  ;;  %v1517_v58 = vadd.f32 %v1511_v38, %v1499_v53  ;;  %v1529_v34 = vmul.f32 %v3258_v36, %v1523_v37  ;;  %v1559_v47 = vmul.f32 %v3103_v11, %v3075_v4 }
 0xebf   :  { %2280 = vpow2.f32 %v1380_v15  ;;  %v1518_v54 = vadd.f32 %v1512_v13, %v1500_v12  ;;  %v1530_v6 = vmul.f32 %v3258_v36, %v1524_v28  ;;  %v1542_v16 = vmul.f32 %v3113_v7, %v3070_v8 }
 0xec0   :  { %v2263_v35 = vpop.eup %2262 }
 0xec1   :  { %v1438_v49 = vmul.f32 %v2263_v35, %v3107_v40  ;;  %v1450_v2 = vmul.f32 %v2263_v35, %v3111_v50  ;;  %v1468_v56 = vmul.f32 %v2263_v35, %v3117_v29  ;;  %v1486_v50 = vmul.f32 %v2263_v35, %v3123_v48 }
 0xec2   :  { %v1504_v29 = vmul.f32 %v2263_v35, %v3126_v51  ;;  %v1522_v48 = vmul.f32 %v2263_v35, %v3129_v20  ;;  %v3267_v51 = vld [vmem:[%s3414_s1 + $0x30] sm:$0xff]  ;;  %v1535_v20 = vadd.f32 %v1529_v34, %v1517_v58  ;;  %v1540_v43 = vmul.f32 %v2263_v35, %v3140_v22 }
 0xec3   :  { %v3244_v17 = vpop.eup %2264  ;;  %v1444_v60 = vmul.f32 %v3170_v19, %v1438_v49  ;;  %v1456_v40 = vmul.f32 %v3176_v57, %v1450_v2  ;;  %v1474_v0 = vmul.f32 %v3206_v32, %v1468_v56  ;;  %v1547_v14 = vmul.f32 %v3267_v51, %v1541_v30 }
 0xec4   :  { %v3249_v1 = vpop.eup %2266  ;;  %v1492_v10 = vmul.f32 %v3220_v23, %v1486_v50  ;;  %v1510_v61 = vmul.f32 %v3231_v9, %v1504_v29  ;;  %v1536_v53 = vadd.f32 %v1530_v6, %v1518_v54  ;;  %v1528_v37 = vmul.f32 %v3258_v36, %v1522_v48  ;;  %v3307_v50 = vld [vmem:[%s3414_s1 + $0x38] sm:$0xff] }
 0xec5   :  { %v1388_v42 = vadd.f32 %v3249_v1, %v3244_v17  ;;  %v1462_v52 = vadd.f32 %v1456_v40, %v1444_v60  ;;  %v3261_v41 = vpop.eup %2268  ;;  %v1558_v12 = vmul.f32 %v2263_v35, %v3152_v24  ;;  %v1548_v30 = vmul.f32 %v3267_v51, %v1542_v16  ;;  %v3300_v35 = vpop.xlane.xlu1 %885 }
 0xec6   :  { %v3273_v21 = vpop.eup %2270  ;;  %v1560_v24 = vmul.f32 %v3113_v7, %v3079_v18  ;;  %v1553_v54 = vadd.f32 %v1547_v14, %v1535_v20  ;;  %v1565_v48 = vmul.f32 %v3307_v50, %v1559_v47 }
 0xec7   :  { %v1394_v3 = vadd.f32 %v3261_v41, %v1388_v42  ;;  %v1480_v31 = vadd.f32 %v1474_v0, %v1462_v52  ;;  %v1564_v29 = vmul.f32 %v3307_v50, %v1558_v12  ;;  %v1554_v18 = vadd.f32 %v1548_v30, %v1536_v53 }
 0xec8   :  { %v2273_v27 = vpop.eup %2272  ;;  %v1566_v6 = vmul.f32 %v3307_v50, %v1560_v24  ;;  %v1571_v20 = vadd.f32 %v1565_v48, %v1553_v54 }
 0xec9   :  { %v1400_v4 = vadd.f32 %v3273_v21, %v1394_v3  ;;  %v1498_v11 = vadd.f32 %v1492_v10, %v1480_v31  ;;  %v1441_v33 = vmul.f32 %v2273_v27, %v3132_v63  ;;  %v1453_v15 = vmul.f32 %v2273_v27, %v3137_v39  ;;  %v3284_v38 = vpop.eup %2274  ;;  %v938_v53 = vpop.xlane.xlu1 %937 }
 0xeca   :  { %v1471_v49 = vmul.f32 %v2273_v27, %v3149_v62  ;;  %v1489_v22 = vmul.f32 %v2273_v27, %v3158_v5  ;;  %v3293_v63 = vpop.eup %2276  ;;  %v1546_v39 = vmul.f32 %v3267_v51, %v1540_v43  ;;  %v1507_v62 = vmul.f32 %v2273_v27, %v3179_v26 }
 0xecb   :  { %v1406_v2 = vadd.f32 %v3284_v38, %v1400_v4  ;;  %v1516_v8 = vadd.f32 %v1510_v61, %v1498_v11  ;;  %v1447_v56 = vmul.f32 %v3170_v19, %v1441_v33  ;;  %v1459_v58 = vmul.f32 %v3176_v57, %v1453_v15  ;;  %v2279_v40 = vpop.eup %2278 }
 0xecc   :  { %v1477_v60 = vmul.f32 %v3206_v32, %v1471_v49  ;;  %v1525_v7 = vmul.f32 %v2273_v27, %v3188_v59  ;;  %v1495_v0 = vmul.f32 %v3220_v23, %v1489_v22  ;;  %v2281_v34 = vpop.eup %2280  ;;  %v1513_v3 = vmul.f32 %v3231_v9, %v1507_v62 }
 0xecd   :  { %v1412_v5 = vadd.f32 %v3293_v63, %v1406_v2  ;;  %v1534_v13 = vadd.f32 %v1528_v37, %v1516_v8  ;;  %v1465_v28 = vadd.f32 %v1459_v58, %v1447_v56  ;;  %v1543_v14 = vmul.f32 %v2273_v27, %v3195_v44  ;;  %v990_v12 = vpop.xlane.xlu1 %989 }
 0xece   :  { %v1203_v59 = vmax.f32 %v3109_v46, %v3300_v35  ;;  %v1572_v43 = vadd.f32 %v1566_v6, %v1554_v18  ;;  %v1531_v47 = vmul.f32 %v3258_v36, %v1525_v7  ;;  %v1561_v4 = vmul.f32 %v2273_v27, %v3201_v45 }
 0xecf   :  { %v1418_v26 = vadd.f32 %v2279_v40, %v1412_v5  ;;  %v1552_v42 = vadd.f32 %v1546_v39, %v1534_v13  ;;  %v1483_v52 = vadd.f32 %v1477_v60, %v1465_v28  ;;  %v1549_v44 = vmul.f32 %v3267_v51, %v1543_v14 }
 0xed0   :  { %v1209_v33 = vmax.f32 %v1203_v59, %v938_v53  ;;  %v1567_v37 = vmul.f32 %v3307_v50, %v1561_v4 }
 0xed1   :  { %v1424_v31 = vadd.f32 %v2281_v34, %v1418_v26  ;;  %v1570_v10 = vadd.f32 %v1564_v29, %v1552_v42  ;;  %v1501_v61 = vadd.f32 %v1495_v0, %v1483_v52 }
 0xed2   :  { %v1215_v22 = vmax.f32 %v1209_v33, %v990_v12 }
 0xed3   :  { %2282 = vrcp.f32 %v1424_v31  ;;  %2094 = vmatprep.mubr.msk.f32.mxu1 %vm220_vm6, %v1570_v10  ;;  %v1519_v16 = vadd.f32 %v1513_v3, %v1501_v61 }
 0xed4   :  { %2095 = vmatmul.mubr.msk.f32.vlgmr.msra.gmra.mxu1 %vm220_vm6, %v1571_v20  ;;  %v1221_v2 = vmax.f32 %v1215_v22, %v3121_v25 }
 0xed5   :  { %2097 = vmatprep.mubr.msk.f32.mxu1 %vm220_vm6, %v1572_v43  ;;  %v1537_v11 = vadd.f32 %v1531_v47, %v1519_v16 }
 0xed6   :  { %v1227_v39 = vmax.f32 %v1221_v2, %v3135_v55 }
 0xed7   :  { %v1555_v15 = vadd.f32 %v1549_v44, %v1537_v11 }
 0xed9   :  { %v1573_v49 = vadd.f32 %v1567_v37, %v1555_v15 }
 0xedb   :  { %2098 = vmatmul.mubr.msk.f32.gmra.mxu1 %vm220_vm6, %v1573_v49 }
 0xee0   :  { %v2283_v8 = vpop.eup %2282 }
 0xee1   :  { %v1146_v45 = vpop.xlane.xlu1 %1145  ;;  %v1442_v27 = vmul.f32 %v2283_v8, %v3244_v17  ;;  %v1454_v56 = vmul.f32 %v2283_v8, %v3249_v1  ;;  %v1472_v58 = vmul.f32 %v2283_v8, %v3261_v41  ;;  %v1490_v5 = vmul.f32 %v2283_v8, %v3273_v21 }
 0xee2   :  { %v1233_v62 = vmax.f32 %v1227_v39, %v1146_v45  ;;  %v1508_v17 = vmul.f32 %v2283_v8, %v3284_v38  ;;  %v1526_v1 = vmul.f32 %v2283_v8, %v3293_v63  ;;  %v1544_v52 = vmul.f32 %v2283_v8, %v2279_v40 }
 0xee3   :  { %v1448_v30 = vmul.f32 %v3170_v19, %v1442_v27  ;;  %v1460_v24 = vmul.f32 %v3176_v57, %v1454_v56  ;;  %v1478_v60 = vmul.f32 %v3206_v32, %v1472_v58  ;;  %v1496_v26 = vmul.f32 %v3220_v23, %v1490_v5 }
 0xee4   :  { %v1514_v6 = vmul.f32 %v3231_v9, %v1508_v17  ;;  %v1532_v63 = vmul.f32 %v3258_v36, %v1526_v1  ;;  %v1550_v40 = vmul.f32 %v3267_v51, %v1544_v52 }
 0xee5   :  { %v1197_v13 = vpop.xlane.xlu1 %1196  ;;  %v1466_v28 = vadd.f32 %v1460_v24, %v1448_v30 }
 0xee6   :  { %v1239_v29 = vmax.f32 %v1233_v62, %v1197_v13 }
 0xee7   :  { %v1484_v54 = vadd.f32 %v1478_v60, %v1466_v28 }
 0xee8   :  { %v1245_v41 = vsub.f32 %v3109_v46, %v1239_v29  ;;  %v1263_v18 = vsub.f32 %v3300_v35, %v1239_v29  ;;  %v1281_v7 = vsub.f32 %v938_v53, %v1239_v29  ;;  %v1299_v42 = vsub.f32 %v990_v12, %v1239_v29 }
 0xee9   :  { %v1502_v48 = vadd.f32 %v1496_v26, %v1484_v54  ;;  %v1317_v38 = vsub.f32 %v3121_v25, %v1239_v29  ;;  %v1562_v46 = vmul.f32 %v2283_v8, %v2281_v34  ;;  %v1335_v10 = vsub.f32 %v3135_v55, %v1239_v29 }
 0xeea   :  { %v1256_v21 = vmul.f32 1.442695, %v1245_v41  ;;  %v1274_v0 = vmul.f32 1.442695, %v1263_v18  ;;  %v1292_v3 = vmul.f32 1.442695, %v1281_v7  ;;  %v1353_v59 = vsub.f32 %v1146_v45, %v1239_v29 }
 0xeeb   :  { %v1520_v31 = vadd.f32 %v1514_v6, %v1502_v48  ;;  %v1310_v35 = vmul.f32 1.442695, %v1299_v42  ;;  %v1328_v14 = vmul.f32 1.442695, %v1317_v38  ;;  %v1568_v43 = vmul.f32 %v3307_v50, %v1562_v46 }
 0xeec   :  { %2284 = vpow2.f32 %v1256_v21  ;;  %v1346_v25 = vmul.f32 1.442695, %v1335_v10  ;;  %v1371_v53 = vsub.f32 %v1197_v13, %v1239_v29  ;;  %v1364_v47 = vmul.f32 1.442695, %v1353_v59 }
 0xeed   :  { %2286 = vpow2.f32 %v1274_v0  ;;  %v1538_v61 = vadd.f32 %v1532_v63, %v1520_v31 }
 0xeee   :  { %2288 = vpow2.f32 %v1292_v3  ;;  %v1382_v34 = vmul.f32 1.442695, %v1371_v53 }
 0xeef   :  { %v1556_v20 = vadd.f32 %v1550_v40, %v1538_v61  ;;  %2290 = vpow2.f32 %v1310_v35 }
 0xef0   :  { %2292 = vpow2.f32 %v1328_v14 }
 0xef1   :  { %v1574_v16 = vadd.f32 %v1568_v43, %v1556_v20  ;;  %2294 = vpow2.f32 %v1346_v25 }
 0xef2   :  { %2296 = vpow2.f32 %v1364_v47 }
 0xef3   :  { %2100 = vmatprep.mubr.msk.f32.mxu1 %vm220_vm6, %v1574_v16  ;;  %2298 = vpow2.f32 %v1382_v34 }
 0xef9   :  { %v2285_v55 = vpop.eup %2284 }
 0xefa   :  { %v2287_v4 = vpop.eup %2286 }
 0xefb   :  { %v1389_v11 = vadd.f32 %v2287_v4, %v2285_v55  ;;  %v2289_v44 = vpop.eup %2288 }
 0xefc   :  { %v2291_v15 = vpop.eup %2290 }
 0xefd   :  { %v1395_v33 = vadd.f32 %v2289_v44, %v1389_v11  ;;  %v2293_v12 = vpop.eup %2292 }
 0xefe   :  { %v2295_v22 = vpop.eup %2294 }
 0xeff   :  { %v1401_v37 = vadd.f32 %v2291_v15, %v1395_v33  ;;  %v2297_v8 = vpop.eup %2296 }
 0xf00   :  { %v2299_v27 = vpop.eup %2298 }
 0xf01   :  { %v1407_v49 = vadd.f32 %v2293_v12, %v1401_v37 }
 0xf03   :  { %v1413_v2 = vadd.f32 %v2295_v22, %v1407_v49 }
 0xf05   :  { %v1419_v45 = vadd.f32 %v2297_v8, %v1413_v2 }
 0xf07   :  { %v1425_v56 = vadd.f32 %v2299_v27, %v1419_v45 }
 0xf09   :  { %2300 = vrcp.f32 %v1425_v56 }
 0xf16   :  { %v2301_v58 = vpop.eup %2300 }
 0xf17   :  { %v1443_v39 = vmul.f32 %v2301_v58, %v2285_v55  ;;  %v1455_v30 = vmul.f32 %v2301_v58, %v2287_v4  ;;  %v1473_v24 = vmul.f32 %v2301_v58, %v2289_v44  ;;  %v1509_v62 = vmul.f32 %v2301_v58, %v2293_v12 }
 0xf18   :  { %v1527_v5 = vmul.f32 %v2301_v58, %v2295_v22  ;;  %v1491_v60 = vmul.f32 %v2301_v58, %v2291_v15  ;;  %v1545_v7 = vmul.f32 %v2301_v58, %v2297_v8  ;;  %v1563_v52 = vmul.f32 %v2301_v58, %v2299_v27 }
 0xf19   :  { %v1449_v13 = vmul.f32 %v3170_v19, %v1443_v39  ;;  %v1461_v28 = vmul.f32 %v3176_v57, %v1455_v30  ;;  %v1479_v17 = vmul.f32 %v3206_v32, %v1473_v24  ;;  %v1515_v18 = vmul.f32 %v3231_v9, %v1509_v62  ;;  %v2113_v32 = vpop.f32.mrf.mxu0 }
 0xf1a   :  { %v1497_v1 = vmul.f32 %v3220_v23, %v1491_v60  ;;  %v1533_v42 = vmul.f32 %v3258_v36, %v1527_v5  ;;  %v1551_v19 = vmul.f32 %v3267_v51, %v1545_v7  ;;  %v1569_v57 = vmul.f32 %v3307_v50, %v1563_v52  ;;  %v1948_v36 = vld [vmem:[%s3419_s6] ss:$0 sm:$0xff]  ;;  %s2414_s6 = smov [#allocation7]  }
 0xf1b   :  { %v1467_v29 = vadd.f32 %v1461_v28, %v1449_v13  ;;  %v1768_v23 = vpop.f32.mrf.mxu0  ;;  %s1899_s20 = sshll.u32 %s2414_s6, 4  ;;  %s1900_s20 = int_to_ptr.vmem [resolvable:$true] %s1899_s20 }
 0xf1c   :  { %s2374_s4 = scalar_lea.vmem %s1900_s20, 768  ;;  %p2379_p11 = scmp.lt.s32.totalorder %s1900_s20, %s1900_s20 }
 0xf1d   :  { %v1485_v54 = vadd.f32 %v1479_v17, %v1467_v29  ;;  %v2116_v31 = vpop.f32.mrf.mxu0  ;;  %p2375_p10 = scmp.ne.s32.totalorder %s1900_s20, %s2374_s4  ;;  %p2380_p12 = scmp.lt.s32.totalorder %s2374_s4, %s2374_s4 }
 0xf1f   :  { %v1503_v41 = vadd.f32 %v1497_v1, %v1485_v54  ;;  %v1778_v35 = vpop.f32.mrf.mxu0  ;;  %p2381_p13 = por %p2380_p12, %p2379_p11 }
 0xf21   :  { %v1521_v26 = vadd.f32 %v1515_v18, %v1503_v41  ;;  %p2382_p0 = pnand %p2381_p13, %p2375_p10 }
 0xf23   :  { %v1539_v21 = vadd.f32 %v1533_v42, %v1521_v26 }
 0xf25   :  { %v1557_v0 = vadd.f32 %v1551_v19, %v1539_v21 }
 0xf27   :  { %v1575_v48 = vadd.f32 %v1569_v57, %v1557_v0 }
 0xf29   :  { %2101 = vmatmul.mubr.msk.f32.gmra.mxu1 %vm220_vm6, %v1575_v48 }
 0xf74   :  { %v2119_v53 = vpop.f32.mrf.mxu0 }
 0xf76   :  { %v1788_v47 = vpop.f32.mrf.mxu0 }
 0xf94   :  { %v2096_v6 = vpop.f32.mrf.mxu1 }
 0xf95   :  { %v1774_v38 = vadd.f32 %v2113_v32, %v2096_v6 }
 0xf96   :  { %v1668_v3 = vpop.f32.mrf.mxu1 }
 0xf97   :  { %v1769_v9 = vadd.f32 %v1768_v23, %v1668_v3  ;;  %v3361_v51 = vadd.f32 %v1948_v36, %v1774_v38 }
 0xf99   :  { %v3359_v63 = vadd.f32 %v1948_v36, %v1769_v9  ;;  %v1813_v14 = vsel %vm106_vm0, %v3361_v51, -inf }
 0xf9b   :  { %v2099_v46 = vpop.f32.mrf.mxu1  ;;  %v1810_v50 = vsel %vm106_vm0, %v3359_v63, -inf }
 0xf9c   :  { %1811 = vmax.xlane.f32.xlu1 %v1810_v50  ;;  %v1784_v40 = vadd.f32 %v2116_v31, %v2099_v46 }
 0xf9d   :  { %v1678_v10 = vpop.f32.mrf.mxu1 }
 0xf9e   :  { %v1779_v61 = vadd.f32 %v1778_v35, %v1678_v10  ;;  %v3371_v43 = vadd.f32 %v1948_v36, %v1784_v40 }
 0xfa0   :  { %v3367_v59 = vadd.f32 %v1948_v36, %v1779_v61  ;;  %1814 = vmax.xlane.f32.xlu1 %v1813_v14  ;;  %v1819_v25 = vsel %vm106_vm0, %v3371_v43, -inf }
 0xfa2   :  { %v1816_v20 = vsel %vm106_vm0, %v3367_v59, -inf }
 0xfa4   :  { %1817 = vmax.xlane.f32.xlu1 %v1816_v20 }
 0xfa8   :  { %1820 = vmax.xlane.f32.xlu1 %v1819_v25 }
 0xfe9   :  { %v2102_v16 = vpop.f32.mrf.mxu1 }
 0xfea   :  { %v1794_v55 = vadd.f32 %v2119_v53, %v2102_v16 }
 0xfeb   :  { %v1688_v34 = vpop.f32.mrf.mxu1 }
 0xfec   :  { %v1789_v4 = vadd.f32 %v1788_v47, %v1688_v34  ;;  %v3377_v44 = vadd.f32 %v1948_v36, %v1794_v55 }
 0xfee   :  { %v3375_v11 = vadd.f32 %v1948_v36, %v1789_v4  ;;  %v1825_v15 = vsel %vm106_vm0, %v3377_v44, -inf }
 0xff0   :  { %v1822_v33 = vsel %vm106_vm0, %v3375_v11, -inf }
 0xff1   :  { %1823 = vmax.xlane.f32.xlu1 %v1822_v33 }
 0xff5   :  { %1826 = vmax.xlane.f32.xlu1 %v1825_v15 }
0x1025   :  { %v1812_v37 = vpop.xlane.xlu1 %1811 }
0x1026   :  { %v1828_v12 = vsub.f32 %v3359_v63, %v1812_v37 }
0x1028   :  { %v1834_v49 = vmul.f32 1.442695, %v1828_v12 }
0x1029   :  { %v1815_v22 = vpop.xlane.xlu1 %1814 }
0x102a   :  { %2302 = vpow2.f32 %v1834_v49  ;;  %v1829_v2 = vsub.f32 %v3361_v51, %v1815_v22 }
0x102c   :  { %v1836_v8 = vmul.f32 1.442695, %v1829_v2 }
0x102d   :  { %v1818_v45 = vpop.xlane.xlu1 %1817 }
0x102e   :  { %2304 = vpow2.f32 %v1836_v8  ;;  %v1830_v27 = vsub.f32 %v3367_v59, %v1818_v45 }
0x1030   :  { %v1838_v56 = vmul.f32 1.442695, %v1830_v27 }
0x1031   :  { %v1821_v58 = vpop.xlane.xlu1 %1820 }
0x1032   :  { %2306 = vpow2.f32 %v1838_v56  ;;  %v1831_v39 = vsub.f32 %v3371_v43, %v1821_v58 }
0x1034   :  { %v1840_v30 = vmul.f32 1.442695, %v1831_v39 }
0x1036   :  { %2308 = vpow2.f32 %v1840_v30 }
0x1037   :  { %v2303_v24 = vpop.eup %2302 }
0x1038   :  { %v1846_v62 = vsel %vm106_vm0, %v2303_v24, 0.0 }
0x1039   :  { %1847 = vadd.xlane.f32.xlu0 %v1846_v62 }
0x103b   :  { %v2305_v5 = vpop.eup %2304 }
0x103c   :  { %v1849_v13 = vsel %vm106_vm0, %v2305_v5, 0.0 }
0x103d   :  { %1850 = vadd.xlane.f32.xlu1 %v1849_v13 }
0x103f   :  { %v2307_v28 = vpop.eup %2306 }
0x1040   :  { %v1852_v60 = vsel %vm106_vm0, %v2307_v28, 0.0 }
0x1041   :  { %1853 = vadd.xlane.f32.xlu1 %v1852_v60 }
0x1043   :  { %v2309_v29 = vpop.eup %2308 }
0x1044   :  { %v1855_v17 = vsel %vm106_vm0, %v2309_v29, 0.0 }
0x1045   :  { %1856 = vadd.xlane.f32.xlu1 %v1855_v17 }
0x107a   :  { %v1824_v54 = vpop.xlane.xlu1 %1823 }
0x107b   :  { %v1832_v1 = vsub.f32 %v3375_v11, %v1824_v54 }
0x107d   :  { %v1842_v41 = vmul.f32 1.442695, %v1832_v1 }
0x107e   :  { %v1827_v18 = vpop.xlane.xlu1 %1826 }
0x107f   :  { %2310 = vpow2.f32 %v1842_v41  ;;  %v1833_v7 = vsub.f32 %v3377_v44, %v1827_v18 }
0x1081   :  { %v1844_v26 = vmul.f32 1.442695, %v1833_v7 }
0x1083   :  { %2312 = vpow2.f32 %v1844_v26 }
0x108c   :  { %v2311_v42 = vpop.eup %2310 }
0x108d   :  { %v1858_v52 = vsel %vm106_vm0, %v2311_v42, 0.0 }
0x108e   :  { %1859 = vadd.xlane.f32.xlu1 %v1858_v52 }
0x1090   :  { %v2313_v21 = vpop.eup %2312 }
0x1091   :  { %v1861_v19 = vsel %vm106_vm0, %v2313_v21, 0.0 }
0x1092   :  { %1862 = vadd.xlane.f32.xlu1 %v1861_v19 }
0x10c2   :  { %v1848_v0 = vpop.xlane.xlu0 %1847 }
0x10c3   :  { %2314 = vlog2.f32 %v1848_v0 }
0x10c6   :  { %v1851_v57 = vpop.xlane.xlu1 %1850 }
0x10c7   :  { %2316 = vlog2.f32 %v1851_v57 }
0x10ca   :  { %v1854_v48 = vpop.xlane.xlu1 %1853 }
0x10cb   :  { %2318 = vlog2.f32 %v1854_v48 }
0x10ce   :  { %v1857_v32 = vpop.xlane.xlu1 %1856 }
0x10cf   :  { %2320 = vlog2.f32 %v1857_v32 }
0x10d0   :  { %v2315_v6 = vpop.eup %2314 }
0x10d1   :  { %v1865_v23 = vmul.f32 0.6931472, %v2315_v6 }
0x10d3   :  { %v1876_v3 = vadd.f32 %v1865_v23, %v1812_v37 }
0x10d4   :  { %v2317_v38 = vpop.eup %2316 }
0x10d5   :  { %v1882_v9 = vsub.f32 %v3359_v63, %v1876_v3  ;;  %v1867_v36 = vmul.f32 0.6931472, %v2317_v38 }
0x10d7   :  { %1888 = vst.msk [vmem:[#allocation7] sm:$0xff] %vm106_vm0, %v1882_v9  ;;  %v1877_v31 = vadd.f32 %v1867_v36, %v1815_v22 }
0x10d8   :  { %v2319_v46 = vpop.eup %2318 }
0x10d9   :  { %v1883_v50 = vsub.f32 %v3361_v51, %v1877_v31  ;;  %v1869_v35 = vmul.f32 0.6931472, %v2319_v46 }
0x10db   :  { %1889 = vst.msk [vmem:[#allocation7 + $0x8] sm:$0xff] %vm106_vm0, %v1883_v50  ;;  %v1878_v10 = vadd.f32 %v1869_v35, %v1818_v45 }
0x10dc   :  { %v2321_v61 = vpop.eup %2320 }
0x10dd   :  { %v1884_v40 = vsub.f32 %v3367_v59, %v1878_v10  ;;  %v1871_v14 = vmul.f32 0.6931472, %v2321_v61 }
0x10df   :  { %1890 = vst.msk [vmem:[#allocation7 + $0x10] sm:$0xff] %vm106_vm0, %v1884_v40  ;;  %v1879_v20 = vadd.f32 %v1871_v14, %v1821_v58 }
0x10e1   :  { %v1885_v63 = vsub.f32 %v3371_v43, %v1879_v20 }
0x10e3   :  { %1891 = vst.msk [vmem:[#allocation7 + $0x18] sm:$0xff] %vm106_vm0, %v1885_v63 }
0x1117   :  { %v1860_v25 = vpop.xlane.xlu1 %1859 }
0x1118   :  { %2322 = vlog2.f32 %v1860_v25 }
0x111b   :  { %v1863_v53 = vpop.xlane.xlu1 %1862 }
0x111c   :  { %2324 = vlog2.f32 %v1863_v53 }
0x1125   :  { %v2323_v51 = vpop.eup %2322 }
0x1126   :  { %v1873_v16 = vmul.f32 0.6931472, %v2323_v51 }
0x1128   :  { %v1880_v47 = vadd.f32 %v1873_v16, %v1824_v54 }
0x1129   :  { %v2325_v34 = vpop.eup %2324 }
0x112a   :  { %v1886_v55 = vsub.f32 %v3375_v11, %v1880_v47  ;;  %v1875_v4 = vmul.f32 0.6931472, %v2325_v34 }
0x112c   :  { %1892 = vst.msk [vmem:[#allocation7 + $0x20] sm:$0xff] %vm106_vm0, %v1886_v55  ;;  %v1881_v59 = vadd.f32 %v1875_v4, %v1827_v18 }
0x112e   :  { %v1887_v43 = vsub.f32 %v3377_v44, %v1881_v59 }
0x1130   :  { %1893 = vst.msk [vmem:[#allocation7 + $0x28] sm:$0xff] %vm106_vm0, %v1887_v43 }
0x1131   :  { %2385 = shalt.err (!%p2382_p0)
}
0x1132   :  { %1905 = dma.vmem_to_hbm [thread:$0]  %s1900_s20, 768, %s3420_s7, [#allocation4], %s2402_s9, %s2402_s9, %s2403_s10  }
0x1133   :  { %2398 = dma.done.wait [#allocation4], 768  }
0x1134   :  { %2399 = vsyncadd [#allocation4], 4294966528 }
0x1135   :  { %1909 = vsyncpa [#allocation3], 1 }
0x1136   :  { %1910 = vsyncpa [#allocation6], 1 }
0x1137   :  { %1911 = vsyncpa [#allocation4], 1 }

</bundles_post_ra>
